<compile_context>
chip_gen: v6e
topology: v6e:2x2x1
jax: 0.10.0
libtpu: 0.0.40
codegen_flags: <defaults>
</compile_context>

<pallas_src>
import math

import jax
import jax.numpy as jnp
from jax.experimental import pallas as pl
from jax.experimental.pallas import tpu as pltpu

# ---- module-level constants (stand-ins for the originals) -------------------
Z_SIZE = 4
ENCODER_HIDDEN1_SIZE = 32    # hidden_message_size
ENCODER_HIDDEN2_SIZE = 32    # declared but unused by the layers (as in the reference)
ENCODER_HIDDEN3_SIZE = 16
ENCODER_HIDDEN4_SIZE = 16
EPS = 1e-9

MESSAGE_SIZE = 24
OBS_SIZE = 8
BATCH = 8

HM = ENCODER_HIDDEN1_SIZE
H3 = ENCODER_HIDDEN3_SIZE
H4 = ENCODER_HIDDEN4_SIZE
OBS = OBS_SIZE
LANES = 128
N_LAYERS = 13


def _softplus(x):
    # numerically-stable softplus, matches torch.nn.functional.softplus
    return jnp.logaddexp(x, 0.0)


# ------------------------------ the kernel -----------------------------------
def encoder_kernel(msg_ref, eps_ref, w_ref, b_ref, out_ref, s_ref):
    """w_ref: (13,128,128) zero-padded weight tiles; b_ref: (13,128) biases.
    msg_ref: (B,128) message lane-padded with zeros.
    eps_ref: (B,32) packed N(0,1) noise [oa(8)|ot(8)|pos(2)|z(4)|pad].
    out_ref: (B,128) lane-dense result slab.  s_ref: (B,128) VMEM scratch."""

    def layer(x, i, relu=True):
        y = jnp.dot(x, w_ref[i], preferred_element_type=jnp.float32) + b_ref[i:i + 1, :]
        return jnp.maximum(y, 0.0) if relu else y

    eps = eps_ref[...]

    # ---- enc_hidden: Linear/ReLU x3, then nan_to_num ------------------------
    h = layer(msg_ref[...], 0)
    h = layer(h, 1)
    mh = layer(h, 2)
    # torch.nan_to_num: post-ReLU output is non-negative & finite for finite
    # weights, so a single isnan-select suffices (cheaper than full nan_to_num).
    mh = jnp.where(jnp.isnan(mh), 0.0, mh)

    # ---- obs_agents head: one (.,16) matmul gives [loc | raw_scale] ---------
    oaw = layer(layer(mh, 3), 4, relu=False)
    oa_loc = oaw[:, 0:OBS]
    oa_scale = _softplus(oaw[:, OBS:2 * OBS]) + EPS
    oa = oa_loc + oa_scale * eps[:, 0:OBS]

    # ---- obs_targets head ----------------------------------------------------
    otw = layer(layer(mh, 5), 6, relu=False)
    ot_loc = otw[:, 0:OBS]
    ot_scale = _softplus(otw[:, OBS:2 * OBS]) + EPS
    ot = ot_loc + ot_scale * eps[:, OBS:2 * OBS]

    # ---- build concat state [mh | oa | ot | pos | 0...] in one vreg row -----
    s_ref[...] = mh                      # lanes >= HM of mh are exactly zero
    s_ref[:, HM:HM + OBS] = oa
    s_ref[:, HM + OBS:HM + 2 * OBS] = ot

    # ---- pos head: single matmul against the stacked cat([mh,oa,ot]) weight -
    hp = layer(layer(s_ref[...], 7), 8)
    pw = layer(hp, 9, relu=False)
    pos_loc = pw[:, 0:2]
    pos_scale = _softplus(pw[:, 2:4]) + EPS
    pos = pos_loc + pos_scale * eps[:, 16:18]

    # ---- z head: add pos lanes, single matmul against cat([mh,pos,oa,ot]) W -
    s_ref[:, HM + 2 * OBS:HM + 2 * OBS + 2] = pos
    hz = layer(layer(s_ref[...], 10), 11)
    zw = layer(hz, 12, relu=False)
    z_loc = zw[:, 0:Z_SIZE]
    z_scale = _softplus(zw[:, Z_SIZE:2 * Z_SIZE]) + EPS
    z = z_loc + z_scale * eps[:, 18:18 + Z_SIZE]

    # ---- single lane-dense output slab (one writeback DMA) ------------------
    out_ref[...] = jnp.zeros_like(out_ref)
    out_ref[:, 0:8] = oa_loc
    out_ref[:, 8:16] = oa_scale
    out_ref[:, 16:24] = ot_loc
    out_ref[:, 24:32] = ot_scale
    out_ref[:, 32:34] = pos_loc
    out_ref[:, 34:36] = pos_scale
    out_ref[:, 36:40] = z_loc
    out_ref[:, 40:44] = z_scale
    out_ref[:, 44:52] = oa
    out_ref[:, 52:60] = ot
    out_ref[:, 60:62] = pos
    out_ref[:, 62:66] = z


# ---- deterministic parameter construction (matches nn.Linear default init) --
def make_params(key):
    dims = [
        (MESSAGE_SIZE, HM * 2), (HM * 2, HM * 2), (HM * 2, HM),       # enc_hidden
        (HM, HM * 2), (HM * 2, OBS * 2),                              # obs_agents_mean_std
        (HM, HM * 2), (HM * 2, OBS * 2),                              # obs_targets_mean_std
        (HM + 2 * OBS, H3 * 2), (H3 * 2, H3), (H3, 2 * 2),            # pos_mean_std
        (HM + 2 * OBS + 2, H4 * 2), (H4 * 2, H4), (H4, Z_SIZE * 2),   # z_mean_std
    ]
    keys = jax.random.split(key, len(dims))
    layers = []
    for k, (fi, fo) in zip(keys, dims):
        kw, kb = jax.random.split(k)
        bound = 1.0 / math.sqrt(fi)
        W = jax.random.uniform(kw, (fi, fo), jnp.float32, -bound, bound)
        b = jax.random.uniform(kb, (fo,), jnp.float32, -bound, bound)
        layers.append((W, b))
    return layers


def pack_params(layers):
    """Pack all 13 Linear layers into one (13,128,128) weight slab and one
    (13,128) bias slab (zero padded).  Layer 10 (z_mean_std[0]) has its rows
    permuted from PyTorch's cat order [mh,pos,oa,ot] to the kernel's state
    lane layout [mh,oa,ot,pos]."""
    w_slab = jnp.zeros((N_LAYERS, LANES, LANES), jnp.float32)
    b_slab = jnp.zeros((N_LAYERS, LANES), jnp.float32)
    for i, (W, b) in enumerate(layers):
        if i == 10:
            W = jnp.concatenate(
                [W[0:HM],                              # mh rows
                 W[HM + 2:HM + 2 + OBS],               # oa rows
                 W[HM + 2 + OBS:HM + 2 + 2 * OBS],     # ot rows
                 W[HM:HM + 2]],                        # pos rows
                axis=0)
        ki, ko = W.shape
        w_slab = w_slab.at[i, :ki, :ko].set(W)
        b_slab = b_slab.at[i, :ko].set(b)
    return w_slab, b_slab


def encoder_forward(messages, noises, w_slab, b_slab):
    """Full Encoder forward as one Pallas kernel (4 input DMAs, 1 output DMA)."""
    B = messages.shape[0]
    f32 = jnp.float32
    msg_p = jnp.zeros((B, LANES), f32).at[:, :MESSAGE_SIZE].set(messages)
    eps_p = jnp.zeros((B, 32), f32)
    eps_p = eps_p.at[:, 0:OBS].set(noises[0])
    eps_p = eps_p.at[:, OBS:2 * OBS].set(noises[1])
    eps_p = eps_p.at[:, 16:18].set(noises[2])
    eps_p = eps_p.at[:, 18:18 + Z_SIZE].set(noises[3])

    vmem = pl.BlockSpec(memory_space=pltpu.MemorySpace.VMEM)
    # TODO(synk): for large message batches, add a leading grid axis over rows
    # (M = 128-256 per step) with dimension_semantics=("parallel",) so v7x's
    # second TensorCore is used; at B=8 a gridless call is the right shape.
    out = pl.pallas_call(
        encoder_kernel,
        out_shape=jax.ShapeDtypeStruct((B, LANES), f32),
        in_specs=[vmem, vmem, vmem, vmem],
        out_specs=vmem,
        scratch_shapes=[pltpu.VMEM((B, LANES), f32)],
    )(msg_p, eps_p, w_slab, b_slab)

    return (out[:, 0:8], out[:, 8:16],          # obs_agents loc / scale
            out[:, 16:24], out[:, 24:32],       # obs_targets loc / scale
            out[:, 32:34], out[:, 34:36],       # pos loc / scale
            out[:, 36:40], out[:, 40:44],       # z loc / scale
            out[:, 44:52], out[:, 52:60],       # obs_agents / obs_targets samples
            out[:, 60:62], out[:, 62:66])       # pos / z samples


# ---- pure-JAX reference for verification ------------------------------------
def encoder_reference(messages, noises, layers):
    relu = lambda v: jnp.maximum(v, 0.0)
    sp = jax.nn.softplus
    eps_oa, eps_ot, eps_pos, eps_z = noises

    def lin(x, i):
        W, b = layers[i]
        return x @ W + b

    h = relu(lin(messages, 0))
    h = relu(lin(h, 1))
    mh = jnp.nan_to_num(relu(lin(h, 2)))

    ha = relu(lin(mh, 3))
    oaw = lin(ha, 4)
    oa_loc, oa_scale = oaw[:, :OBS], sp(oaw[:, OBS:]) + EPS
    oa = oa_loc + oa_scale * eps_oa

    ht = relu(lin(mh, 5))
    otw = lin(ht, 6)
    ot_loc, ot_scale = otw[:, :OBS], sp(otw[:, OBS:]) + EPS
    ot = ot_loc + ot_scale * eps_ot

    hp = relu(lin(jnp.concatenate([mh, oa, ot], axis=-1), 7))
    hp = relu(lin(hp, 8))
    pw = lin(hp, 9)
    pos_loc, pos_scale = pw[:, :2], sp(pw[:, 2:]) + EPS
    pos = pos_loc + pos_scale * eps_pos

    hz = relu(lin(jnp.concatenate([mh, pos, oa, ot], axis=-1), 10))
    hz = relu(lin(hz, 11))
    zw = lin(hz, 12)
    z_loc, z_scale = zw[:, :Z_SIZE], sp(zw[:, Z_SIZE:]) + EPS
    z = z_loc + z_scale * eps_z

    return (oa_loc, oa_scale, ot_loc, ot_scale, pos_loc, pos_scale,
            z_loc, z_scale, oa, ot, pos, z)


if __name__ == "__main__":
    key = jax.random.PRNGKey(0)
    k_param, k_msg, k1, k2, k3, k4 = jax.random.split(key, 6)

    layers = make_params(k_param)
    w_slab, b_slab = pack_params(layers)

    messages = jax.random.normal(k_msg, (BATCH, MESSAGE_SIZE), jnp.float32)
    noises = [
        jax.random.normal(k1, (BATCH, OBS_SIZE), jnp.float32),   # eps obs_agents
        jax.random.normal(k2, (BATCH, OBS_SIZE), jnp.float32),   # eps obs_targets
        jax.random.normal(k3, (BATCH, 2), jnp.float32),          # eps pos
        jax.random.normal(k4, (BATCH, Z_SIZE), jnp.float32),     # eps z
    ]

    outs = encoder_forward(messages, noises, w_slab, b_slab)
    outs = jax.block_until_ready(outs)

    refs = encoder_reference(messages, noises, layers)
    for o, r in zip(outs, refs):
        assert o.shape == r.shape and o.dtype == r.dtype
        assert jnp.allclose(o, r, rtol=1e-3, atol=1e-3), "mismatch vs reference"

    # TODO(synk): probtorch.Trace log-prob bookkeeping, `labels`-conditioned
    # sampling and the `extract_distributions` stacking are host-side glue and
    # are not part of the kernel; loc/scale for every distribution are returned.
    print("KERNEL_OK")
</pallas_src>

<mosaic_0001>
module attributes {stable_mosaic.version = 11 : i64} {
  func.func @encoder_kernel(%arg0: memref<8x128xf32, #tpu.memory_space<vmem>>, %arg1: memref<8x32xf32, #tpu.memory_space<vmem>>, %arg2: memref<13x128x128xf32, #tpu.memory_space<vmem>>, %arg3: memref<13x128xf32, #tpu.memory_space<vmem>>, %arg4: memref<8x128xf32, #tpu.memory_space<vmem>>, %arg5: memref<8x128xf32, #tpu.memory_space<vmem>>) attributes {dimension_semantics = [], scalar_prefetch = 0 : i64, scratch_operands = 1 : i64, tpu.core_type = #tpu.core_type<tc>} {
    %c0 = arith.constant 0 : index
    %c0_0 = arith.constant 0 : index
    %0 = vector.load %arg1[%c0, %c0_0] : memref<8x32xf32, #tpu.memory_space<vmem>>, vector<8x32xf32>
    %c0_1 = arith.constant 0 : index
    %c0_2 = arith.constant 0 : index
    %1 = vector.load %arg0[%c0_1, %c0_2] : memref<8x128xf32, #tpu.memory_space<vmem>>, vector<8x128xf32>
    %c0_3 = arith.constant 0 : index
    %c0_4 = arith.constant 0 : index
    %c0_5 = arith.constant 0 : index
    %2 = vector.load %arg2[%c0_3, %c0_4, %c0_5] : memref<13x128x128xf32, #tpu.memory_space<vmem>>, vector<1x128x128xf32>
    %3 = vector.shape_cast %2 : vector<1x128x128xf32> to vector<128x128xf32>
    %cst = arith.constant dense<0.000000e+00> : vector<8x128xf32>
    %4 = tpu.matmul %1, %3, %cst {dimension_numbers = #tpu.dot_dimension_numbers<[1], [0], [0], [1], [0, 0, 1, 1], [], []>} : vector<8x128xf32>, vector<128x128xf32>, vector<8x128xf32> -> vector<8x128xf32>
    %c0_6 = arith.constant 0 : index
    %c0_7 = arith.constant 0 : index
    %5 = vector.load %arg3[%c0_6, %c0_7] : memref<13x128xf32, #tpu.memory_space<vmem>>, vector<1x128xf32>
    %6 = vector.broadcast %5 : vector<1x128xf32> to vector<8x128xf32>
    %7 = arith.addf %4, %6 : vector<8x128xf32>
    %cst_8 = arith.constant 0.000000e+00 : f32
    %8 = vector.broadcast %cst_8 : f32 to vector<8x128xf32>
    %9 = arith.maximumf %7, %8 : vector<8x128xf32>
    %c1 = arith.constant 1 : index
    %c0_9 = arith.constant 0 : index
    %c0_10 = arith.constant 0 : index
    %10 = vector.load %arg2[%c1, %c0_9, %c0_10] : memref<13x128x128xf32, #tpu.memory_space<vmem>>, vector<1x128x128xf32>
    %11 = vector.shape_cast %10 : vector<1x128x128xf32> to vector<128x128xf32>
    %cst_11 = arith.constant dense<0.000000e+00> : vector<8x128xf32>
    %12 = tpu.matmul %9, %11, %cst_11 {dimension_numbers = #tpu.dot_dimension_numbers<[1], [0], [0], [1], [0, 0, 1, 1], [], []>} : vector<8x128xf32>, vector<128x128xf32>, vector<8x128xf32> -> vector<8x128xf32>
    %c1_12 = arith.constant 1 : index
    %c0_13 = arith.constant 0 : index
    %13 = vector.load %arg3[%c1_12, %c0_13] : memref<13x128xf32, #tpu.memory_space<vmem>>, vector<1x128xf32>
    %14 = vector.broadcast %13 : vector<1x128xf32> to vector<8x128xf32>
    %15 = arith.addf %12, %14 : vector<8x128xf32>
    %cst_14 = arith.constant 0.000000e+00 : f32
    %16 = vector.broadcast %cst_14 : f32 to vector<8x128xf32>
    %17 = arith.maximumf %15, %16 : vector<8x128xf32>
    %c2 = arith.constant 2 : index
    %c0_15 = arith.constant 0 : index
    %c0_16 = arith.constant 0 : index
    %18 = vector.load %arg2[%c2, %c0_15, %c0_16] : memref<13x128x128xf32, #tpu.memory_space<vmem>>, vector<1x128x128xf32>
    %19 = vector.shape_cast %18 : vector<1x128x128xf32> to vector<128x128xf32>
    %cst_17 = arith.constant dense<0.000000e+00> : vector<8x128xf32>
    %20 = tpu.matmul %17, %19, %cst_17 {dimension_numbers = #tpu.dot_dimension_numbers<[1], [0], [0], [1], [0, 0, 1, 1], [], []>} : vector<8x128xf32>, vector<128x128xf32>, vector<8x128xf32> -> vector<8x128xf32>
    %c2_18 = arith.constant 2 : index
    %c0_19 = arith.constant 0 : index
    %21 = vector.load %arg3[%c2_18, %c0_19] : memref<13x128xf32, #tpu.memory_space<vmem>>, vector<1x128xf32>
    %22 = vector.broadcast %21 : vector<1x128xf32> to vector<8x128xf32>
    %23 = arith.addf %20, %22 : vector<8x128xf32>
    %cst_20 = arith.constant 0.000000e+00 : f32
    %24 = vector.broadcast %cst_20 : f32 to vector<8x128xf32>
    %25 = arith.maximumf %23, %24 : vector<8x128xf32>
    %26 = arith.cmpf one, %25, %25 : vector<8x128xf32>
    %cst_21 = arith.constant 0.000000e+00 : f32
    %27 = vector.broadcast %cst_21 : f32 to vector<8x128xf32>
    %28 = arith.select %26, %27, %25 : vector<8x128xi1>, vector<8x128xf32>
    %c3 = arith.constant 3 : index
    %c0_22 = arith.constant 0 : index
    %c0_23 = arith.constant 0 : index
    %29 = vector.load %arg2[%c3, %c0_22, %c0_23] : memref<13x128x128xf32, #tpu.memory_space<vmem>>, vector<1x128x128xf32>
    %30 = vector.shape_cast %29 : vector<1x128x128xf32> to vector<128x128xf32>
    %cst_24 = arith.constant dense<0.000000e+00> : vector<8x128xf32>
    %31 = tpu.matmul %28, %30, %cst_24 {dimension_numbers = #tpu.dot_dimension_numbers<[1], [0], [0], [1], [0, 0, 1, 1], [], []>} : vector<8x128xf32>, vector<128x128xf32>, vector<8x128xf32> -> vector<8x128xf32>
    %c3_25 = arith.constant 3 : index
    %c0_26 = arith.constant 0 : index
    %32 = vector.load %arg3[%c3_25, %c0_26] : memref<13x128xf32, #tpu.memory_space<vmem>>, vector<1x128xf32>
    %33 = vector.broadcast %32 : vector<1x128xf32> to vector<8x128xf32>
    %34 = arith.addf %31, %33 : vector<8x128xf32>
    %cst_27 = arith.constant 0.000000e+00 : f32
    %35 = vector.broadcast %cst_27 : f32 to vector<8x128xf32>
    %36 = arith.maximumf %34, %35 : vector<8x128xf32>
    %c4 = arith.constant 4 : index
    %c0_28 = arith.constant 0 : index
    %c0_29 = arith.constant 0 : index
    %37 = vector.load %arg2[%c4, %c0_28, %c0_29] : memref<13x128x128xf32, #tpu.memory_space<vmem>>, vector<1x128x128xf32>
    %38 = vector.shape_cast %37 : vector<1x128x128xf32> to vector<128x128xf32>
    %cst_30 = arith.constant dense<0.000000e+00> : vector<8x128xf32>
    %39 = tpu.matmul %36, %38, %cst_30 {dimension_numbers = #tpu.dot_dimension_numbers<[1], [0], [0], [1], [0, 0, 1, 1], [], []>} : vector<8x128xf32>, vector<128x128xf32>, vector<8x128xf32> -> vector<8x128xf32>
    %c4_31 = arith.constant 4 : index
    %c0_32 = arith.constant 0 : index
    %40 = vector.load %arg3[%c4_31, %c0_32] : memref<13x128xf32, #tpu.memory_space<vmem>>, vector<1x128xf32>
    %41 = vector.broadcast %40 : vector<1x128xf32> to vector<8x128xf32>
    %42 = arith.addf %39, %41 : vector<8x128xf32>
    %43 = vector.extract_strided_slice %42 {offsets = [0, 0], sizes = [8, 8], strides = [1, 1]} : vector<8x128xf32> to vector<8x8xf32>
    %44 = vector.extract_strided_slice %42 {offsets = [0, 8], sizes = [8, 8], strides = [1, 1]} : vector<8x128xf32> to vector<8x8xf32>
    %cst_33 = arith.constant 0.000000e+00 : f32
    %45 = vector.broadcast %cst_33 : f32 to vector<8x8xf32>
    %46 = arith.maximumf %44, %45 : vector<8x8xf32>
    %47 = vector.broadcast %cst_33 : f32 to vector<8x8xf32>
    %48 = arith.subf %44, %47 : vector<8x8xf32>
    %49 = arith.cmpf one, %48, %48 : vector<8x8xf32>
    %50 = vector.broadcast %cst_33 : f32 to vector<8x8xf32>
    %51 = arith.addf %44, %50 : vector<8x8xf32>
    %52 = math.absf %48 : vector<8x8xf32>
    %cst_34 = arith.constant 0.000000e+00 : f32
    %53 = vector.broadcast %cst_34 : f32 to vector<8x8xf32>
    %54 = arith.subf %53, %52 : vector<8x8xf32>
    %55 = math.exp %54 : vector<8x8xf32>
    %56 = math.log1p %55 : vector<8x8xf32>
    %57 = arith.addf %46, %56 : vector<8x8xf32>
    %58 = arith.select %49, %51, %57 : vector<8x8xi1>, vector<8x8xf32>
    %cst_35 = arith.constant 9.99999971E-10 : f32
    %59 = vector.broadcast %cst_35 : f32 to vector<8x8xf32>
    %60 = arith.addf %58, %59 : vector<8x8xf32>
    %61 = vector.extract_strided_slice %0 {offsets = [0, 0], sizes = [8, 8], strides = [1, 1]} : vector<8x32xf32> to vector<8x8xf32>
    %62 = arith.mulf %60, %61 : vector<8x8xf32>
    %63 = arith.addf %43, %62 : vector<8x8xf32>
    %c5 = arith.constant 5 : index
    %c0_36 = arith.constant 0 : index
    %c0_37 = arith.constant 0 : index
    %64 = vector.load %arg2[%c5, %c0_36, %c0_37] : memref<13x128x128xf32, #tpu.memory_space<vmem>>, vector<1x128x128xf32>
    %65 = vector.shape_cast %64 : vector<1x128x128xf32> to vector<128x128xf32>
    %cst_38 = arith.constant dense<0.000000e+00> : vector<8x128xf32>
    %66 = tpu.matmul %28, %65, %cst_38 {dimension_numbers = #tpu.dot_dimension_numbers<[1], [0], [0], [1], [0, 0, 1, 1], [], []>} : vector<8x128xf32>, vector<128x128xf32>, vector<8x128xf32> -> vector<8x128xf32>
    %c5_39 = arith.constant 5 : index
    %c0_40 = arith.constant 0 : index
    %67 = vector.load %arg3[%c5_39, %c0_40] : memref<13x128xf32, #tpu.memory_space<vmem>>, vector<1x128xf32>
    %68 = vector.broadcast %67 : vector<1x128xf32> to vector<8x128xf32>
    %69 = arith.addf %66, %68 : vector<8x128xf32>
    %cst_41 = arith.constant 0.000000e+00 : f32
    %70 = vector.broadcast %cst_41 : f32 to vector<8x128xf32>
    %71 = arith.maximumf %69, %70 : vector<8x128xf32>
    %c6 = arith.constant 6 : index
    %c0_42 = arith.constant 0 : index
    %c0_43 = arith.constant 0 : index
    %72 = vector.load %arg2[%c6, %c0_42, %c0_43] : memref<13x128x128xf32, #tpu.memory_space<vmem>>, vector<1x128x128xf32>
    %73 = vector.shape_cast %72 : vector<1x128x128xf32> to vector<128x128xf32>
    %cst_44 = arith.constant dense<0.000000e+00> : vector<8x128xf32>
    %74 = tpu.matmul %71, %73, %cst_44 {dimension_numbers = #tpu.dot_dimension_numbers<[1], [0], [0], [1], [0, 0, 1, 1], [], []>} : vector<8x128xf32>, vector<128x128xf32>, vector<8x128xf32> -> vector<8x128xf32>
    %c6_45 = arith.constant 6 : index
    %c0_46 = arith.constant 0 : index
    %75 = vector.load %arg3[%c6_45, %c0_46] : memref<13x128xf32, #tpu.memory_space<vmem>>, vector<1x128xf32>
    %76 = vector.broadcast %75 : vector<1x128xf32> to vector<8x128xf32>
    %77 = arith.addf %74, %76 : vector<8x128xf32>
    %78 = vector.extract_strided_slice %77 {offsets = [0, 0], sizes = [8, 8], strides = [1, 1]} : vector<8x128xf32> to vector<8x8xf32>
    %79 = vector.extract_strided_slice %77 {offsets = [0, 8], sizes = [8, 8], strides = [1, 1]} : vector<8x128xf32> to vector<8x8xf32>
    %cst_47 = arith.constant 0.000000e+00 : f32
    %80 = vector.broadcast %cst_47 : f32 to vector<8x8xf32>
    %81 = arith.maximumf %79, %80 : vector<8x8xf32>
    %82 = vector.broadcast %cst_47 : f32 to vector<8x8xf32>
    %83 = arith.subf %79, %82 : vector<8x8xf32>
    %84 = arith.cmpf one, %83, %83 : vector<8x8xf32>
    %85 = vector.broadcast %cst_47 : f32 to vector<8x8xf32>
    %86 = arith.addf %79, %85 : vector<8x8xf32>
    %87 = math.absf %83 : vector<8x8xf32>
    %cst_48 = arith.constant 0.000000e+00 : f32
    %88 = vector.broadcast %cst_48 : f32 to vector<8x8xf32>
    %89 = arith.subf %88, %87 : vector<8x8xf32>
    %90 = math.exp %89 : vector<8x8xf32>
    %91 = math.log1p %90 : vector<8x8xf32>
    %92 = arith.addf %81, %91 : vector<8x8xf32>
    %93 = arith.select %84, %86, %92 : vector<8x8xi1>, vector<8x8xf32>
    %cst_49 = arith.constant 9.99999971E-10 : f32
    %94 = vector.broadcast %cst_49 : f32 to vector<8x8xf32>
    %95 = arith.addf %93, %94 : vector<8x8xf32>
    %96 = vector.extract_strided_slice %0 {offsets = [0, 8], sizes = [8, 8], strides = [1, 1]} : vector<8x32xf32> to vector<8x8xf32>
    %97 = arith.mulf %95, %96 : vector<8x8xf32>
    %98 = arith.addf %78, %97 : vector<8x8xf32>
    %c0_50 = arith.constant 0 : index
    %c0_51 = arith.constant 0 : index
    %99 = vector.load %arg5[%c0_50, %c0_51] : memref<8x128xf32, #tpu.memory_space<vmem>>, vector<8x128xf32>
    tpu.vector_store %arg5[%c0_50, %c0_51], %28 {strides = array<i32>} : memref<8x128xf32, #tpu.memory_space<vmem>>, vector<8x128xf32>,
    %c0_52 = arith.constant 0 : index
    %c32 = arith.constant 32 : index
    %100 = vector.load %arg5[%c0_52, %c32] : memref<8x128xf32, #tpu.memory_space<vmem>>, vector<8x8xf32>
    tpu.vector_store %arg5[%c0_52, %c32], %63 {strides = array<i32>} : memref<8x128xf32, #tpu.memory_space<vmem>>, vector<8x8xf32>,
    %c0_53 = arith.constant 0 : index
    %c40 = arith.constant 40 : index
    %101 = vector.load %arg5[%c0_53, %c40] : memref<8x128xf32, #tpu.memory_space<vmem>>, vector<8x8xf32>
    tpu.vector_store %arg5[%c0_53, %c40], %98 {strides = array<i32>} : memref<8x128xf32, #tpu.memory_space<vmem>>, vector<8x8xf32>,
    %c0_54 = arith.constant 0 : index
    %c0_55 = arith.constant 0 : index
    %102 = vector.load %arg5[%c0_54, %c0_55] : memref<8x128xf32, #tpu.memory_space<vmem>>, vector<8x128xf32>
    %c7 = arith.constant 7 : index
    %c0_56 = arith.constant 0 : index
    %c0_57 = arith.constant 0 : index
    %103 = vector.load %arg2[%c7, %c0_56, %c0_57] : memref<13x128x128xf32, #tpu.memory_space<vmem>>, vector<1x128x128xf32>
    %104 = vector.shape_cast %103 : vector<1x128x128xf32> to vector<128x128xf32>
    %cst_58 = arith.constant dense<0.000000e+00> : vector<8x128xf32>
    %105 = tpu.matmul %102, %104, %cst_58 {dimension_numbers = #tpu.dot_dimension_numbers<[1], [0], [0], [1], [0, 0, 1, 1], [], []>} : vector<8x128xf32>, vector<128x128xf32>, vector<8x128xf32> -> vector<8x128xf32>
    %c7_59 = arith.constant 7 : index
    %c0_60 = arith.constant 0 : index
    %106 = vector.load %arg3[%c7_59, %c0_60] : memref<13x128xf32, #tpu.memory_space<vmem>>, vector<1x128xf32>
    %107 = vector.broadcast %106 : vector<1x128xf32> to vector<8x128xf32>
    %108 = arith.addf %105, %107 : vector<8x128xf32>
    %cst_61 = arith.constant 0.000000e+00 : f32
    %109 = vector.broadcast %cst_61 : f32 to vector<8x128xf32>
    %110 = arith.maximumf %108, %109 : vector<8x128xf32>
    %c8 = arith.constant 8 : index
    %c0_62 = arith.constant 0 : index
    %c0_63 = arith.constant 0 : index
    %111 = vector.load %arg2[%c8, %c0_62, %c0_63] : memref<13x128x128xf32, #tpu.memory_space<vmem>>, vector<1x128x128xf32>
    %112 = vector.shape_cast %111 : vector<1x128x128xf32> to vector<128x128xf32>
    %cst_64 = arith.constant dense<0.000000e+00> : vector<8x128xf32>
    %113 = tpu.matmul %110, %112, %cst_64 {dimension_numbers = #tpu.dot_dimension_numbers<[1], [0], [0], [1], [0, 0, 1, 1], [], []>} : vector<8x128xf32>, vector<128x128xf32>, vector<8x128xf32> -> vector<8x128xf32>
    %c8_65 = arith.constant 8 : index
    %c0_66 = arith.constant 0 : index
    %114 = vector.load %arg3[%c8_65, %c0_66] : memref<13x128xf32, #tpu.memory_space<vmem>>, vector<1x128xf32>
    %115 = vector.broadcast %114 : vector<1x128xf32> to vector<8x128xf32>
    %116 = arith.addf %113, %115 : vector<8x128xf32>
    %cst_67 = arith.constant 0.000000e+00 : f32
    %117 = vector.broadcast %cst_67 : f32 to vector<8x128xf32>
    %118 = arith.maximumf %116, %117 : vector<8x128xf32>
    %c9 = arith.constant 9 : index
    %c0_68 = arith.constant 0 : index
    %c0_69 = arith.constant 0 : index
    %119 = vector.load %arg2[%c9, %c0_68, %c0_69] : memref<13x128x128xf32, #tpu.memory_space<vmem>>, vector<1x128x128xf32>
    %120 = vector.shape_cast %119 : vector<1x128x128xf32> to vector<128x128xf32>
    %cst_70 = arith.constant dense<0.000000e+00> : vector<8x128xf32>
    %121 = tpu.matmul %118, %120, %cst_70 {dimension_numbers = #tpu.dot_dimension_numbers<[1], [0], [0], [1], [0, 0, 1, 1], [], []>} : vector<8x128xf32>, vector<128x128xf32>, vector<8x128xf32> -> vector<8x128xf32>
    %c9_71 = arith.constant 9 : index
    %c0_72 = arith.constant 0 : index
    %122 = vector.load %arg3[%c9_71, %c0_72] : memref<13x128xf32, #tpu.memory_space<vmem>>, vector<1x128xf32>
    %123 = vector.broadcast %122 : vector<1x128xf32> to vector<8x128xf32>
    %124 = arith.addf %121, %123 : vector<8x128xf32>
    %125 = vector.extract_strided_slice %124 {offsets = [0, 0], sizes = [8, 2], strides = [1, 1]} : vector<8x128xf32> to vector<8x2xf32>
    %126 = vector.extract_strided_slice %124 {offsets = [0, 2], sizes = [8, 2], strides = [1, 1]} : vector<8x128xf32> to vector<8x2xf32>
    %cst_73 = arith.constant 0.000000e+00 : f32
    %127 = vector.broadcast %cst_73 : f32 to vector<8x2xf32>
    %128 = arith.maximumf %126, %127 : vector<8x2xf32>
    %129 = vector.broadcast %cst_73 : f32 to vector<8x2xf32>
    %130 = arith.subf %126, %129 : vector<8x2xf32>
    %131 = arith.cmpf one, %130, %130 : vector<8x2xf32>
    %132 = vector.broadcast %cst_73 : f32 to vector<8x2xf32>
    %133 = arith.addf %126, %132 : vector<8x2xf32>
    %134 = math.absf %130 : vector<8x2xf32>
    %cst_74 = arith.constant 0.000000e+00 : f32
    %135 = vector.broadcast %cst_74 : f32 to vector<8x2xf32>
    %136 = arith.subf %135, %134 : vector<8x2xf32>
    %137 = math.exp %136 : vector<8x2xf32>
    %138 = math.log1p %137 : vector<8x2xf32>
    %139 = arith.addf %128, %138 : vector<8x2xf32>
    %140 = arith.select %131, %133, %139 : vector<8x2xi1>, vector<8x2xf32>
    %cst_75 = arith.constant 9.99999971E-10 : f32
    %141 = vector.broadcast %cst_75 : f32 to vector<8x2xf32>
    %142 = arith.addf %140, %141 : vector<8x2xf32>
    %143 = vector.extract_strided_slice %0 {offsets = [0, 16], sizes = [8, 2], strides = [1, 1]} : vector<8x32xf32> to vector<8x2xf32>
    %144 = arith.mulf %142, %143 : vector<8x2xf32>
    %145 = arith.addf %125, %144 : vector<8x2xf32>
    %c0_76 = arith.constant 0 : index
    %c48 = arith.constant 48 : index
    %146 = vector.load %arg5[%c0_76, %c48] : memref<8x128xf32, #tpu.memory_space<vmem>>, vector<8x2xf32>
    tpu.vector_store %arg5[%c0_76, %c48], %145 {strides = array<i32>} : memref<8x128xf32, #tpu.memory_space<vmem>>, vector<8x2xf32>,
    %c0_77 = arith.constant 0 : index
    %c0_78 = arith.constant 0 : index
    %147 = vector.load %arg5[%c0_77, %c0_78] : memref<8x128xf32, #tpu.memory_space<vmem>>, vector<8x128xf32>
    %c10 = arith.constant 10 : index
    %c0_79 = arith.constant 0 : index
    %c0_80 = arith.constant 0 : index
    %148 = vector.load %arg2[%c10, %c0_79, %c0_80] : memref<13x128x128xf32, #tpu.memory_space<vmem>>, vector<1x128x128xf32>
    %149 = vector.shape_cast %148 : vector<1x128x128xf32> to vector<128x128xf32>
    %cst_81 = arith.constant dense<0.000000e+00> : vector<8x128xf32>
    %150 = tpu.matmul %147, %149, %cst_81 {dimension_numbers = #tpu.dot_dimension_numbers<[1], [0], [0], [1], [0, 0, 1, 1], [], []>} : vector<8x128xf32>, vector<128x128xf32>, vector<8x128xf32> -> vector<8x128xf32>
    %c10_82 = arith.constant 10 : index
    %c0_83 = arith.constant 0 : index
    %151 = vector.load %arg3[%c10_82, %c0_83] : memref<13x128xf32, #tpu.memory_space<vmem>>, vector<1x128xf32>
    %152 = vector.broadcast %151 : vector<1x128xf32> to vector<8x128xf32>
    %153 = arith.addf %150, %152 : vector<8x128xf32>
    %cst_84 = arith.constant 0.000000e+00 : f32
    %154 = vector.broadcast %cst_84 : f32 to vector<8x128xf32>
    %155 = arith.maximumf %153, %154 : vector<8x128xf32>
    %c11 = arith.constant 11 : index
    %c0_85 = arith.constant 0 : index
    %c0_86 = arith.constant 0 : index
    %156 = vector.load %arg2[%c11, %c0_85, %c0_86] : memref<13x128x128xf32, #tpu.memory_space<vmem>>, vector<1x128x128xf32>
    %157 = vector.shape_cast %156 : vector<1x128x128xf32> to vector<128x128xf32>
    %cst_87 = arith.constant dense<0.000000e+00> : vector<8x128xf32>
    %158 = tpu.matmul %155, %157, %cst_87 {dimension_numbers = #tpu.dot_dimension_numbers<[1], [0], [0], [1], [0, 0, 1, 1], [], []>} : vector<8x128xf32>, vector<128x128xf32>, vector<8x128xf32> -> vector<8x128xf32>
    %c11_88 = arith.constant 11 : index
    %c0_89 = arith.constant 0 : index
    %159 = vector.load %arg3[%c11_88, %c0_89] : memref<13x128xf32, #tpu.memory_space<vmem>>, vector<1x128xf32>
    %160 = vector.broadcast %159 : vector<1x128xf32> to vector<8x128xf32>
    %161 = arith.addf %158, %160 : vector<8x128xf32>
    %cst_90 = arith.constant 0.000000e+00 : f32
    %162 = vector.broadcast %cst_90 : f32 to vector<8x128xf32>
    %163 = arith.maximumf %161, %162 : vector<8x128xf32>
    %c12 = arith.constant 12 : index
    %c0_91 = arith.constant 0 : index
    %c0_92 = arith.constant 0 : index
    %164 = vector.load %arg2[%c12, %c0_91, %c0_92] : memref<13x128x128xf32, #tpu.memory_space<vmem>>, vector<1x128x128xf32>
    %165 = vector.shape_cast %164 : vector<1x128x128xf32> to vector<128x128xf32>
    %cst_93 = arith.constant dense<0.000000e+00> : vector<8x128xf32>
    %166 = tpu.matmul %163, %165, %cst_93 {dimension_numbers = #tpu.dot_dimension_numbers<[1], [0], [0], [1], [0, 0, 1, 1], [], []>} : vector<8x128xf32>, vector<128x128xf32>, vector<8x128xf32> -> vector<8x128xf32>
    %c12_94 = arith.constant 12 : index
    %c0_95 = arith.constant 0 : index
    %167 = vector.load %arg3[%c12_94, %c0_95] : memref<13x128xf32, #tpu.memory_space<vmem>>, vector<1x128xf32>
    %168 = vector.broadcast %167 : vector<1x128xf32> to vector<8x128xf32>
    %169 = arith.addf %166, %168 : vector<8x128xf32>
    %170 = vector.extract_strided_slice %169 {offsets = [0, 0], sizes = [8, 4], strides = [1, 1]} : vector<8x128xf32> to vector<8x4xf32>
    %171 = vector.extract_strided_slice %169 {offsets = [0, 4], sizes = [8, 4], strides = [1, 1]} : vector<8x128xf32> to vector<8x4xf32>
    %cst_96 = arith.constant 0.000000e+00 : f32
    %172 = vector.broadcast %cst_96 : f32 to vector<8x4xf32>
    %173 = arith.maximumf %171, %172 : vector<8x4xf32>
    %174 = vector.broadcast %cst_96 : f32 to vector<8x4xf32>
    %175 = arith.subf %171, %174 : vector<8x4xf32>
    %176 = arith.cmpf one, %175, %175 : vector<8x4xf32>
    %177 = vector.broadcast %cst_96 : f32 to vector<8x4xf32>
    %178 = arith.addf %171, %177 : vector<8x4xf32>
    %179 = math.absf %175 : vector<8x4xf32>
    %cst_97 = arith.constant 0.000000e+00 : f32
    %180 = vector.broadcast %cst_97 : f32 to vector<8x4xf32>
    %181 = arith.subf %180, %179 : vector<8x4xf32>
    %182 = math.exp %181 : vector<8x4xf32>
    %183 = math.log1p %182 : vector<8x4xf32>
    %184 = arith.addf %173, %183 : vector<8x4xf32>
    %185 = arith.select %176, %178, %184 : vector<8x4xi1>, vector<8x4xf32>
    %cst_98 = arith.constant 9.99999971E-10 : f32
    %186 = vector.broadcast %cst_98 : f32 to vector<8x4xf32>
    %187 = arith.addf %185, %186 : vector<8x4xf32>
    %188 = vector.extract_strided_slice %0 {offsets = [0, 18], sizes = [8, 4], strides = [1, 1]} : vector<8x32xf32> to vector<8x4xf32>
    %189 = arith.mulf %187, %188 : vector<8x4xf32>
    %190 = arith.addf %170, %189 : vector<8x4xf32>
    %cst_99 = arith.constant 0.000000e+00 : f32
    %191 = vector.broadcast %cst_99 : f32 to vector<8x128xf32>
    %c0_100 = arith.constant 0 : index
    %c0_101 = arith.constant 0 : index
    %192 = vector.load %arg4[%c0_100, %c0_101] : memref<8x128xf32, #tpu.memory_space<vmem>>, vector<8x128xf32>
    tpu.vector_store %arg4[%c0_100, %c0_101], %191 {strides = array<i32>} : memref<8x128xf32, #tpu.memory_space<vmem>>, vector<8x128xf32>,
    %c0_102 = arith.constant 0 : index
    %c0_103 = arith.constant 0 : index
    %193 = vector.load %arg4[%c0_102, %c0_103] : memref<8x128xf32, #tpu.memory_space<vmem>>, vector<8x8xf32>
    tpu.vector_store %arg4[%c0_102, %c0_103], %43 {strides = array<i32>} : memref<8x128xf32, #tpu.memory_space<vmem>>, vector<8x8xf32>,
    %c0_104 = arith.constant 0 : index
    %c8_105 = arith.constant 8 : index
    %194 = vector.load %arg4[%c0_104, %c8_105] : memref<8x128xf32, #tpu.memory_space<vmem>>, vector<8x8xf32>
    tpu.vector_store %arg4[%c0_104, %c8_105], %60 {strides = array<i32>} : memref<8x128xf32, #tpu.memory_space<vmem>>, vector<8x8xf32>,
    %c0_106 = arith.constant 0 : index
    %c16 = arith.constant 16 : index
    %195 = vector.load %arg4[%c0_106, %c16] : memref<8x128xf32, #tpu.memory_space<vmem>>, vector<8x8xf32>
    tpu.vector_store %arg4[%c0_106, %c16], %78 {strides = array<i32>} : memref<8x128xf32, #tpu.memory_space<vmem>>, vector<8x8xf32>,
    %c0_107 = arith.constant 0 : index
    %c24 = arith.constant 24 : index
    %196 = vector.load %arg4[%c0_107, %c24] : memref<8x128xf32, #tpu.memory_space<vmem>>, vector<8x8xf32>
    tpu.vector_store %arg4[%c0_107, %c24], %95 {strides = array<i32>} : memref<8x128xf32, #tpu.memory_space<vmem>>, vector<8x8xf32>,
    %c0_108 = arith.constant 0 : index
    %c32_109 = arith.constant 32 : index
    %197 = vector.load %arg4[%c0_108, %c32_109] : memref<8x128xf32, #tpu.memory_space<vmem>>, vector<8x2xf32>
    tpu.vector_store %arg4[%c0_108, %c32_109], %125 {strides = array<i32>} : memref<8x128xf32, #tpu.memory_space<vmem>>, vector<8x2xf32>,
    %c0_110 = arith.constant 0 : index
    %c34 = arith.constant 34 : index
    %198 = vector.load %arg4[%c0_110, %c34] : memref<8x128xf32, #tpu.memory_space<vmem>>, vector<8x2xf32>
    tpu.vector_store %arg4[%c0_110, %c34], %142 {strides = array<i32>} : memref<8x128xf32, #tpu.memory_space<vmem>>, vector<8x2xf32>,
    %c0_111 = arith.constant 0 : index
    %c36 = arith.constant 36 : index
    %199 = vector.load %arg4[%c0_111, %c36] : memref<8x128xf32, #tpu.memory_space<vmem>>, vector<8x4xf32>
    tpu.vector_store %arg4[%c0_111, %c36], %170 {strides = array<i32>} : memref<8x128xf32, #tpu.memory_space<vmem>>, vector<8x4xf32>,
    %c0_112 = arith.constant 0 : index
    %c40_113 = arith.constant 40 : index
    %200 = vector.load %arg4[%c0_112, %c40_113] : memref<8x128xf32, #tpu.memory_space<vmem>>, vector<8x4xf32>
    tpu.vector_store %arg4[%c0_112, %c40_113], %187 {strides = array<i32>} : memref<8x128xf32, #tpu.memory_space<vmem>>, vector<8x4xf32>,
    %c0_114 = arith.constant 0 : index
    %c44 = arith.constant 44 : index
    %201 = vector.load %arg4[%c0_114, %c44] : memref<8x128xf32, #tpu.memory_space<vmem>>, vector<8x8xf32>
    tpu.vector_store %arg4[%c0_114, %c44], %63 {strides = array<i32>} : memref<8x128xf32, #tpu.memory_space<vmem>>, vector<8x8xf32>,
    %c0_115 = arith.constant 0 : index
    %c52 = arith.constant 52 : index
    %202 = vector.load %arg4[%c0_115, %c52] : memref<8x128xf32, #tpu.memory_space<vmem>>, vector<8x8xf32>
    tpu.vector_store %arg4[%c0_115, %c52], %98 {strides = array<i32>} : memref<8x128xf32, #tpu.memory_space<vmem>>, vector<8x8xf32>,
    %c0_116 = arith.constant 0 : index
    %c60 = arith.constant 60 : index
    %203 = vector.load %arg4[%c0_116, %c60] : memref<8x128xf32, #tpu.memory_space<vmem>>, vector<8x2xf32>
    tpu.vector_store %arg4[%c0_116, %c60], %145 {strides = array<i32>} : memref<8x128xf32, #tpu.memory_space<vmem>>, vector<8x2xf32>,
    %c0_117 = arith.constant 0 : index
    %c62 = arith.constant 62 : index
    %204 = vector.load %arg4[%c0_117, %c62] : memref<8x128xf32, #tpu.memory_space<vmem>>, vector<8x4xf32>
    tpu.vector_store %arg4[%c0_117, %c62], %190 {strides = array<i32>} : memref<8x128xf32, #tpu.memory_space<vmem>>, vector<8x4xf32>,
    return
  }
}

</mosaic_0001>

<bundles_post_ra>
// kernel: tpu_custom_call.1
= control target key start
LH: loop header
LB: loop body
LE: loop exit
PB: predicated region body
PF: predicated region fallthrough
CT: control target
= control target key end

     0   :  { %9 = vsyncpa [#allocation4], 0  ;;  %s2694_s0 = inlined_call_operand.hbm [shape: f32[8,128], index: 0, kind: input, shape index: {}]   ;;  %s2695_s1 = inlined_call_operand.hbm [shape: f32[8,32], index: 1, kind: input, shape index: {}]   ;;  %s2696_s2 = inlined_call_operand.hbm [shape: f32[13,128,128], index: 2, kind: input, shape index: {}]   ;;  %s2697_s3 = inlined_call_operand.hbm [shape: f32[13,128], index: 3, kind: input, shape index: {}]   ;;  %s2698_s4 = inlined_call_operand.hbm [shape: f32[8,128], index: 4, kind: output, shape index: {}]  }
   0x1   :  { %10 = vsyncpa [#allocation7], 0 }
   0x2   :  { %11 = vsyncpa [#allocation10], 0 }
   0x3   :  { %12 = vsyncpa [#allocation5], 0  ;;  %s2323_s15 = smov [#allocation6]   ;;  %s2324_s17 = smov [#allocation3]  }
   0x4   :  { %s29_s16 = sshll.u32 %s2323_s15, 4  ;;  %s19_s18 = sshll.u32 %s2324_s17, 4  ;;  %s30_s16 = int_to_ptr.vmem [resolvable:$true] %s29_s16  ;;  %s20_s18 = int_to_ptr.vmem [resolvable:$true] %s19_s18 }
   0x5   :  { %s2223_s19 = scalar_lea.vmem %s30_s16, 128  ;;  %p2228_p1 = scmp.lt.s32.totalorder %s30_s16, %s30_s16 }
   0x6   :  { %p2224_p0 = scmp.ne.s32.totalorder %s30_s16, %s2223_s19  ;;  %p2229_p2 = scmp.lt.s32.totalorder %s2223_s19, %s2223_s19 }
   0x8   :  { %p2230_p3 = por %p2229_p2, %p2228_p1 }
   0xa   :  { %p2231_p4 = pnand %p2230_p3, %p2224_p0 }
   0xc   :  { %2234 = shalt.err (!%p2231_p4)
}
   0xd   :  { %32 = dma.hbm_to_vmem [thread:$0]  %s2695_s1, 128, %s30_s16, [#allocation7]  }
   0xe   :  { %s2243_s22 = scalar_lea.vmem %s20_s18, 128  ;;  %p2248_p6 = scmp.lt.s32.totalorder %s20_s18, %s20_s18 }
   0xf   :  { %p2244_p5 = scmp.ne.s32.totalorder %s20_s18, %s2243_s22  ;;  %p2249_p7 = scmp.lt.s32.totalorder %s2243_s22, %s2243_s22 }
  0x11   :  { %p2250_p8 = por %p2249_p7, %p2248_p6 }
  0x13   :  { %p2251_p9 = pnand %p2250_p8, %p2244_p5 }
  0x15   :  { %2254 = shalt.err (!%p2251_p9)
}
  0x16   :  { %22 = dma.hbm_to_vmem [thread:$0]  %s2694_s0, 128, %s20_s18, [#allocation4]  }
  0x17   :  { %s2325_s25 = smov [#allocation8]  }
  0x18   :  { %s38_s26 = sshll.u32 %s2325_s25, 4  ;;  %s39_s26 = int_to_ptr.vmem [resolvable:$true] %s38_s26 }
  0x19   :  { %s2263_s27 = scalar_lea.vmem %s39_s26, 26624  ;;  %p2268_p11 = scmp.lt.s32.totalorder %s39_s26, %s39_s26 }
  0x1a   :  { %p2264_p10 = scmp.ne.s32.totalorder %s39_s26, %s2263_s27  ;;  %p2269_p12 = scmp.lt.s32.totalorder %s2263_s27, %s2263_s27 }
  0x1c   :  { %p2270_p13 = por %p2269_p12, %p2268_p11 }
  0x1e   :  { %p2271_p0 = pnand %p2270_p13, %p2264_p10 }
  0x20   :  { %2274 = shalt.err (!%p2271_p0)
}
  0x21   :  { %s2326_s1 = smov 128   ;;  %s2327_s28 = smov 8  }
  0x22   :  { %44 = dma.hbm_to_vmem [thread:$0]  %s2696_s2, 26624, %s39_s26, [#allocation7], %s2326_s1, %s2326_s1, %s2327_s28  }
  0x23   :  { %s2328_s5 = smov [#allocation9]  }
  0x24   :  { %s50_s6 = sshll.u32 %s2328_s5, 4  ;;  %s51_s6 = int_to_ptr.vmem [resolvable:$true] %s50_s6 }
  0x25   :  { %s2283_s0 = scalar_lea.vmem %s51_s6, 256  ;;  %p2288_p2 = scmp.lt.s32.totalorder %s51_s6, %s51_s6 }
  0x26   :  { %p2284_p1 = scmp.ne.s32.totalorder %s51_s6, %s2283_s0  ;;  %p2289_p3 = scmp.lt.s32.totalorder %s2283_s0, %s2283_s0 }
  0x28   :  { %p2290_p4 = por %p2289_p3, %p2288_p2 }
  0x2a   :  { %p2291_p5 = pnand %p2290_p4, %p2284_p1 }
  0x2c   :  { %2294 = shalt.err (!%p2291_p5)
}
  0x2d   :  { %56 = dma.hbm_to_vmem [thread:$0]  %s2697_s3, 256, %s51_s6, [#allocation10], %s2326_s1, %s2326_s1, %s2327_s28  }
  0x2e   :  { %2315 = dma.done.wait [#allocation4], 128  }
  0x2f   :  { %2316 = vsyncadd [#allocation4], 4294967168 }
  0x30   :  { %2317 = dma.done.wait [#allocation7], 26752  }
  0x31   :  { %2318 = vsyncadd [#allocation7], 4294940544 }
  0x32   :  { %2319 = dma.done.wait [#allocation10], 256  }
  0x33   :  { %2320 = vsyncadd [#allocation10], 4294967040  ;;  %v2329_v0 = vmov 0.0   ;;  %vm2330_vm0 = vmmov 0   ;;  %v86_v1 = vld [vmem:[#allocation8 + $0x78] sm:$0xff]  ;;  %v85_v2 = vld [vmem:[#allocation8 + $0x70] sm:$0xff] }
  0x34   :  { %1722 = vmatprep.subr.mxu0 %v2329_v0  ;;  %1405 = vst [vmem:[#allocation11] sm:$0xff] %v2329_v0  ;;  %1754 = vmatprep.mubr.msk.f32.mxu0 %vm2330_vm0, %v2329_v0  ;;  %v84_v3 = vld [vmem:[#allocation8 + $0x68] sm:$0xff]  ;;  %v83_v4 = vld [vmem:[#allocation8 + $0x60] sm:$0xff]  ;;  %v179_v5 = vld [vmem:[#allocation8 + $0xf8] sm:$0xff]  ;;  %vm1406_vm3 = vcmask 64512   ;;  %vm1408_vm6 = vcmask 130112  }
  0x35   :  { %1757 = vmatprep.subr.mxu1 %v2329_v0  ;;  %1789 = vmatprep.mubr.msk.f32.mxu1 %vm2330_vm0, %v2329_v0  ;;  %v82_v6 = vld [vmem:[#allocation8 + $0x58] sm:$0xff]  ;;  %v178_v7 = vld [vmem:[#allocation8 + $0xf0] sm:$0xff]  ;;  %v177_v8 = vld [vmem:[#allocation8 + $0xe8] sm:$0xff]  ;;  %s2331_s2 = smov 120   ;;  %s2332_s3 = smov 32   ;;  %vm780_vm9 = vcmask 326912  }
  0x36   :  { %1723 = vmatpush3.msra.mxu0 %v86_v1  ;;  %1758 = vmatpush3.msra.mxu1 %v179_v5  ;;  %v81_v9 = vld [vmem:[#allocation8 + $0x50] sm:$0xff]  ;;  %v176_v10 = vld [vmem:[#allocation8 + $0xe0] sm:$0xff]  ;;  %v80_v11 = vld [vmem:[#allocation8 + $0x48] sm:$0xff]  ;;  %s2333_s9 = smov 40   ;;  %vm786_vm10 = vcmask 392512   ;;  %s2334_s10 = smov 114  }
  0x37   :  { %1724 = vmatprep.subr.mxu0 %v2329_v0  ;;  %1759 = vmatprep.subr.mxu1 %v2329_v0  ;;  %v175_v12 = vld [vmem:[#allocation8 + $0xd8] sm:$0xff]  ;;  %v79_v13 = vld [vmem:[#allocation8 + $0x40] sm:$0xff]  ;;  %v174_v14 = vld [vmem:[#allocation8 + $0xd0] sm:$0xff]  ;;  %s2335_s11 = smov 126   ;;  %s2336_s12 = smov 48   ;;  %vm1099_vm13 = vcmask 408960  }
  0x38   :  { %1725 = vmatpush3.msra.mxu0 %v85_v2  ;;  %1760 = vmatpush3.msra.mxu1 %v178_v7  ;;  %v78_v15 = vld [vmem:[#allocation8 + $0x38] sm:$0xff]  ;;  %v173_v16 = vld [vmem:[#allocation8 + $0xc8] sm:$0xff]  ;;  %v77_v17 = vld [vmem:[#allocation8 + $0x30] sm:$0xff]  ;;  %s2337_s13 = smov 16   ;;  %vm1414_vm14 = vcmask 195712   ;;  %s2338_s14 = smov 36  }
  0x39   :  { %1726 = vmatprep.subr.mxu0 %v2329_v0  ;;  %1761 = vmatprep.subr.mxu1 %v2329_v0  ;;  %v172_v18 = vld [vmem:[#allocation8 + $0xc0] sm:$0xff]  ;;  %v76_v19 = vld [vmem:[#allocation8 + $0x28] sm:$0xff]  ;;  %v171_v20 = vld [vmem:[#allocation8 + $0xb8] sm:$0xff]  ;;  %s2339_s15 = smov 44   ;;  %s2340_s16 = smov 60  }
  0x3a   :  { %1727 = vmatpush3.msra.mxu0 %v84_v3  ;;  %1762 = vmatpush3.msra.mxu1 %v177_v8  ;;  %v75_v21 = vld [vmem:[#allocation8 + $0x20] sm:$0xff]  ;;  %v170_v22 = vld [vmem:[#allocation8 + $0xb0] sm:$0xff]  ;;  %v74_v23 = vld [vmem:[#allocation8 + $0x18] sm:$0xff]  ;;  %s2341_s17 = smov 124   ;;  %s2342_s18 = smov 52  }
  0x3b   :  { %1728 = vmatprep.subr.mxu0 %v2329_v0  ;;  %1763 = vmatprep.subr.mxu1 %v2329_v0  ;;  %v169_v24 = vld [vmem:[#allocation8 + $0xa8] sm:$0xff]  ;;  %v73_v25 = vld [vmem:[#allocation8 + $0x10] sm:$0xff]  ;;  %v168_v26 = vld [vmem:[#allocation8 + $0xa0] sm:$0xff]  ;;  %s2343_s19 = smov 62   ;;  %s2344_s20 = smov [#allocation11]  }
  0x3c   :  { %1729 = vmatpush3.msra.mxu0 %v83_v4  ;;  %1764 = vmatpush3.msra.mxu1 %v176_v10  ;;  %v72_v27 = vld [vmem:[#allocation8 + $0x8] sm:$0xff]  ;;  %v167_v28 = vld [vmem:[#allocation8 + $0x98] sm:$0xff]  ;;  %v71_v29 = vld [vmem:[#allocation8] sm:$0xff]  ;;  %s1473_s21 = sshll.u32 %s2344_s20, 4  ;;  %s1474_s21 = int_to_ptr.vmem [resolvable:$true] %s1473_s21 }
  0x3d   :  { %1730 = vmatprep.subr.mxu0 %v2329_v0  ;;  %1765 = vmatprep.subr.mxu1 %v2329_v0  ;;  %v70_v30 = vld [vmem:[#allocation3] sm:$0xff]  ;;  %v165_v32 = vld [vmem:[#allocation8 + $0x88] sm:$0xff]  ;;  %v164_v33 = vld [vmem:[#allocation8 + $0x80] sm:$0xff]  ;;  %s2295_s22 = scalar_lea.vmem %s1474_s21, 128  ;;  %p2300_p7 = scmp.lt.s32.totalorder %s1474_s21, %s1474_s21 }
  0x3e   :  { %1731 = vmatpush3.msra.mxu0 %v82_v6  ;;  %1766 = vmatpush3.msra.mxu1 %v175_v12  ;;  %v166_v31 = vld [vmem:[#allocation8 + $0x90] sm:$0xff]  ;;  %v272_v34 = vld [vmem:[#allocation8 + $0x178] sm:$0xff]  ;;  %v270_v36 = vld [vmem:[#allocation8 + $0x168] sm:$0xff]  ;;  %p2296_p6 = scmp.ne.s32.totalorder %s1474_s21, %s2295_s22  ;;  %p2301_p8 = scmp.lt.s32.totalorder %s2295_s22, %s2295_s22 }
  0x3f   :  { %1732 = vmatprep.subr.mxu0 %v2329_v0  ;;  %1767 = vmatprep.subr.mxu1 %v2329_v0  ;;  %v271_v35 = vld [vmem:[#allocation8 + $0x170] sm:$0xff]  ;;  %v269_v37 = vld [vmem:[#allocation8 + $0x160] sm:$0xff]  ;;  %v268_v38 = vld [vmem:[#allocation8 + $0x158] sm:$0xff] }
  0x40   :  { %1733 = vmatpush3.msra.mxu0 %v81_v9  ;;  %1768 = vmatpush3.msra.mxu1 %v174_v14  ;;  %v267_v39 = vld [vmem:[#allocation8 + $0x150] sm:$0xff]  ;;  %v266_v40 = vld [vmem:[#allocation8 + $0x148] sm:$0xff]  ;;  %v265_v41 = vld [vmem:[#allocation8 + $0x140] sm:$0xff]  ;;  %p2302_p9 = por %p2301_p8, %p2300_p7 }
  0x41   :  { %1734 = vmatprep.subr.mxu0 %v2329_v0  ;;  %1769 = vmatprep.subr.mxu1 %v2329_v0  ;;  %v264_v42 = vld [vmem:[#allocation8 + $0x138] sm:$0xff]  ;;  %v263_v43 = vld [vmem:[#allocation8 + $0x130] sm:$0xff]  ;;  %v262_v44 = vld [vmem:[#allocation8 + $0x128] sm:$0xff] }
  0x42   :  { %1735 = vmatpush3.msra.mxu0 %v80_v11  ;;  %1770 = vmatpush3.msra.mxu1 %v173_v16  ;;  %v261_v45 = vld [vmem:[#allocation8 + $0x120] sm:$0xff]  ;;  %v260_v46 = vld [vmem:[#allocation8 + $0x118] sm:$0xff]  ;;  %v259_v52 = vld [vmem:[#allocation8 + $0x110] sm:$0xff]  ;;  %p2303_p10 = pnand %p2302_p9, %p2296_p6 }
  0x43   :  { %1736 = vmatprep.subr.mxu0 %v2329_v0  ;;  %1771 = vmatprep.subr.mxu1 %v2329_v0  ;;  %v1484_v47 = vld [vmem:[#allocation9] ss:$0 sm:$0xff]  ;;  %v258_v53 = vld [vmem:[#allocation8 + $0x108] sm:$0xff]  ;;  %v367_v55 = vld [vmem:[#allocation8 + $0x1f8] sm:$0xff] }
  0x44   :  { %1737 = vmatpush3.msra.mxu0 %v79_v13  ;;  %1772 = vmatpush3.msra.mxu1 %v172_v18  ;;  %v257_v54 = vld [vmem:[#allocation8 + $0x100] sm:$0xff]  ;;  %v366_v56 = vld [vmem:[#allocation8 + $0x1f0] sm:$0xff]  ;;  %v365_v57 = vld [vmem:[#allocation8 + $0x1e8] sm:$0xff] }
  0x45   :  { %1738 = vmatprep.subr.mxu0 %v2329_v0  ;;  %1773 = vmatprep.subr.mxu1 %v2329_v0  ;;  %v364_v58 = vld [vmem:[#allocation8 + $0x1e0] sm:$0xff]  ;;  %v363_v59 = vld [vmem:[#allocation8 + $0x1d8] sm:$0xff]  ;;  %v362_v60 = vld [vmem:[#allocation8 + $0x1d0] sm:$0xff] }
  0x46   :  { %1739 = vmatpush3.msra.mxu0 %v78_v15  ;;  %1774 = vmatpush3.msra.mxu1 %v171_v20  ;;  %v361_v61 = vld [vmem:[#allocation8 + $0x1c8] sm:$0xff]  ;;  %v360_v62 = vld [vmem:[#allocation8 + $0x1c0] sm:$0xff]  ;;  %v359_v63 = vld [vmem:[#allocation8 + $0x1b8] sm:$0xff] }
  0x47   :  { %1740 = vmatprep.subr.mxu0 %v2329_v0  ;;  %1775 = vmatprep.subr.mxu1 %v2329_v0  ;;  %v358_v1 = vld [vmem:[#allocation8 + $0x1b0] sm:$0xff]  ;;  %v357_v2 = vld [vmem:[#allocation8 + $0x1a8] sm:$0xff]  ;;  %v356_v3 = vld [vmem:[#allocation8 + $0x1a0] sm:$0xff] }
  0x48   :  { %1741 = vmatpush3.msra.mxu0 %v77_v17  ;;  %1776 = vmatpush3.msra.mxu1 %v170_v22  ;;  %v355_v4 = vld [vmem:[#allocation8 + $0x198] sm:$0xff]  ;;  %v1485_v5 = vld [vmem:[#allocation9 + $0x1] ss:$0 sm:$0xff]  ;;  %v354_v10 = vld [vmem:[#allocation8 + $0x190] sm:$0xff] }
  0x49   :  { %1742 = vmatprep.subr.mxu0 %v2329_v0  ;;  %1777 = vmatprep.subr.mxu1 %v2329_v0  ;;  %v353_v11 = vld [vmem:[#allocation8 + $0x188] sm:$0xff]  ;;  %v352_v12 = vld [vmem:[#allocation8 + $0x180] sm:$0xff]  ;;  %v460_v13 = vld [vmem:[#allocation8 + $0x278] sm:$0xff] }
  0x4a   :  { %1743 = vmatpush3.msra.mxu0 %v76_v19  ;;  %1778 = vmatpush3.msra.mxu1 %v169_v24  ;;  %v459_v14 = vld [vmem:[#allocation8 + $0x270] sm:$0xff]  ;;  %v458_v15 = vld [vmem:[#allocation8 + $0x268] sm:$0xff]  ;;  %v457_v16 = vld [vmem:[#allocation8 + $0x260] sm:$0xff] }
  0x4b   :  { %1744 = vmatprep.subr.mxu0 %v2329_v0  ;;  %1779 = vmatprep.subr.mxu1 %v2329_v0  ;;  %v456_v17 = vld [vmem:[#allocation8 + $0x258] sm:$0xff]  ;;  %v455_v18 = vld [vmem:[#allocation8 + $0x250] sm:$0xff]  ;;  %v454_v19 = vld [vmem:[#allocation8 + $0x248] sm:$0xff] }
  0x4c   :  { %1745 = vmatpush3.msra.mxu0 %v75_v21  ;;  %1780 = vmatpush3.msra.mxu1 %v168_v26  ;;  %v453_v20 = vld [vmem:[#allocation8 + $0x240] sm:$0xff]  ;;  %v452_v21 = vld [vmem:[#allocation8 + $0x238] sm:$0xff]  ;;  %v451_v22 = vld [vmem:[#allocation8 + $0x230] sm:$0xff] }
  0x4d   :  { %1746 = vmatprep.subr.mxu0 %v2329_v0  ;;  %1781 = vmatprep.subr.mxu1 %v2329_v0  ;;  %v449_v24 = vld [vmem:[#allocation8 + $0x220] sm:$0xff]  ;;  %v447_v26 = vld [vmem:[#allocation8 + $0x210] sm:$0xff] }
  0x4e   :  { %1747 = vmatpush3.msra.mxu0 %v74_v23  ;;  %1782 = vmatpush3.msra.mxu1 %v167_v28  ;;  %v450_v23 = vld [vmem:[#allocation8 + $0x228] sm:$0xff] }
  0x4f   :  { %1748 = vmatprep.subr.mxu0 %v2329_v0  ;;  %1783 = vmatprep.subr.mxu1 %v2329_v0 }
  0x50   :  { %1749 = vmatpush3.msra.mxu0 %v73_v25  ;;  %1784 = vmatpush3.msra.mxu1 %v166_v31  ;;  %v448_v25 = vld [vmem:[#allocation8 + $0x218] sm:$0xff] }
  0x51   :  { %1750 = vmatprep.subr.mxu0 %v2329_v0  ;;  %1785 = vmatprep.subr.mxu1 %v2329_v0 }
  0x52   :  { %1751 = vmatpush3.msra.mxu0 %v72_v27  ;;  %1786 = vmatpush3.msra.mxu1 %v165_v32  ;;  %v1486_v27 = vld [vmem:[#allocation9 + $0x2] ss:$0 sm:$0xff]  ;;  %v581_v32 = vld [vmem:[#allocation8 + $0x2f8] sm:$0xff] }
  0x53   :  { %1752 = vmatprep.subr.mxu0 %v2329_v0  ;;  %1787 = vmatprep.subr.mxu1 %v2329_v0 }
  0x54   :  { %1753 = vmatpush3.msra.mxu0 %v71_v29  ;;  %1788 = vmatpush3.msra.mxu1 %v164_v33 }
  0x55   :  { %1755 = vmatmul.mubr.f32.vlgmr.msra.gmra.mxu0 %v70_v30  ;;  %1792 = vmatprep.subr.mxu0 %v2329_v0 }
  0x56   :  { %1824 = vmatprep.mubr.msk.f32.mxu0 %vm2330_vm0, %v2329_v0  ;;  %1827 = vmatprep.subr.mxu1 %v2329_v0 }
  0x57   :  { %1793 = vmatpush3.msra.mxu0 %v272_v34 }
  0x58   :  { %1794 = vmatprep.subr.mxu0 %v2329_v0 }
  0x59   :  { %1795 = vmatpush3.msra.mxu0 %v271_v35  ;;  %v580_v35 = vld [vmem:[#allocation8 + $0x2f0] sm:$0xff] }
  0x5a   :  { %1796 = vmatprep.subr.mxu0 %v2329_v0 }
  0x5b   :  { %1797 = vmatpush3.msra.mxu0 %v270_v36  ;;  %v579_v36 = vld [vmem:[#allocation8 + $0x2e8] sm:$0xff] }
  0x5c   :  { %1798 = vmatprep.subr.mxu0 %v2329_v0 }
  0x5d   :  { %1799 = vmatpush3.msra.mxu0 %v269_v37  ;;  %v578_v37 = vld [vmem:[#allocation8 + $0x2e0] sm:$0xff] }
  0x5e   :  { %1800 = vmatprep.subr.mxu0 %v2329_v0 }
  0x5f   :  { %1801 = vmatpush3.msra.mxu0 %v268_v38  ;;  %v577_v38 = vld [vmem:[#allocation8 + $0x2d8] sm:$0xff] }
  0x60   :  { %1802 = vmatprep.subr.mxu0 %v2329_v0 }
  0x61   :  { %1803 = vmatpush3.msra.mxu0 %v267_v39  ;;  %v576_v39 = vld [vmem:[#allocation8 + $0x2d0] sm:$0xff] }
  0x62   :  { %1804 = vmatprep.subr.mxu0 %v2329_v0 }
  0x63   :  { %1805 = vmatpush3.msra.mxu0 %v266_v40  ;;  %v575_v40 = vld [vmem:[#allocation8 + $0x2c8] sm:$0xff] }
  0x64   :  { %1806 = vmatprep.subr.mxu0 %v2329_v0 }
  0x65   :  { %1807 = vmatpush3.msra.mxu0 %v265_v41  ;;  %v574_v41 = vld [vmem:[#allocation8 + $0x2c0] sm:$0xff] }
  0x66   :  { %1808 = vmatprep.subr.mxu0 %v2329_v0 }
  0x67   :  { %1809 = vmatpush3.msra.mxu0 %v264_v42  ;;  %v573_v42 = vld [vmem:[#allocation8 + $0x2b8] sm:$0xff] }
  0x68   :  { %1810 = vmatprep.subr.mxu0 %v2329_v0 }
  0x69   :  { %1811 = vmatpush3.msra.mxu0 %v263_v43  ;;  %v572_v43 = vld [vmem:[#allocation8 + $0x2b0] sm:$0xff] }
  0x6a   :  { %1812 = vmatprep.subr.mxu0 %v2329_v0 }
  0x6b   :  { %1813 = vmatpush3.msra.mxu0 %v262_v44  ;;  %v571_v44 = vld [vmem:[#allocation8 + $0x2a8] sm:$0xff] }
  0x6c   :  { %1814 = vmatprep.subr.mxu0 %v2329_v0 }
  0x6d   :  { %1815 = vmatpush3.msra.mxu0 %v261_v45  ;;  %v570_v45 = vld [vmem:[#allocation8 + $0x2a0] sm:$0xff] }
  0x6e   :  { %1816 = vmatprep.subr.mxu0 %v2329_v0 }
  0x6f   :  { %1817 = vmatpush3.msra.mxu0 %v260_v46  ;;  %v569_v46 = vld [vmem:[#allocation8 + $0x298] sm:$0xff] }
  0x70   :  { %1818 = vmatprep.subr.mxu0 %v2329_v0 }
  0x71   :  { %1819 = vmatpush3.msra.mxu0 %v259_v52  ;;  %v2505_v52 = vld [vmem:[#allocation6] sm:$0xff] }
  0x72   :  { %1820 = vmatprep.subr.mxu0 %v2329_v0  ;;  %556 = vrot.lane.b32.xlu0 %v2505_v52, %s2327_s28 }
  0x73   :  { %1821 = vmatpush3.msra.mxu0 %v258_v53  ;;  %v1487_v53 = vld [vmem:[#allocation9 + $0x3] ss:$0 sm:$0xff] }
  0x74   :  { %1822 = vmatprep.subr.mxu0 %v2329_v0 }
  0x75   :  { %1823 = vmatpush3.msra.mxu0 %v257_v54 }
  0x76   :  { %1862 = vmatprep.subr.mxu0 %v2329_v0 }
 0x115   :  { %v158_v48 = vpop.f32.mrf.mxu0 }
 0x116   :  { %v159_v49 = vadd.f32 %v1484_v47, %v158_v48  ;;  %v568_v47 = vld [vmem:[#allocation8 + $0x290] sm:$0xff]  ;;  %v567_v48 = vld [vmem:[#allocation8 + $0x288] sm:$0xff] }
 0x117   :  { %v1756_v50 = vpop.f32.mrf.mxu0 }
 0x118   :  { %v162_v51 = vmax.f32 %v159_v49, 0.0  ;;  %v566_v49 = vld [vmem:[#allocation8 + $0x280] sm:$0xff]  ;;  %v446_v50 = vld [vmem:[#allocation8 + $0x208] sm:$0xff] }
 0x11a   :  { %1790 = vmatmul.mubr.f32.vlgmr.msra.gmra.mxu1 %v162_v51  ;;  %v445_v51 = vld [vmem:[#allocation8 + $0x200] sm:$0xff] }
 0x11b   :  { %1859 = vmatprep.mubr.msk.f32.mxu1 %vm2330_vm0, %v2329_v0  ;;  %1828 = vmatpush3.msra.mxu1 %v367_v55 }
 0x11c   :  { %1829 = vmatprep.subr.mxu1 %v2329_v0 }
 0x11d   :  { %1830 = vmatpush3.msra.mxu1 %v366_v56 }
 0x11e   :  { %1831 = vmatprep.subr.mxu1 %v2329_v0 }
 0x11f   :  { %1832 = vmatpush3.msra.mxu1 %v365_v57 }
 0x120   :  { %1833 = vmatprep.subr.mxu1 %v2329_v0 }
 0x121   :  { %1834 = vmatpush3.msra.mxu1 %v364_v58  ;;  %v674_v58 = vld [vmem:[#allocation8 + $0x378] sm:$0xff] }
 0x122   :  { %1835 = vmatprep.subr.mxu1 %v2329_v0 }
 0x123   :  { %1836 = vmatpush3.msra.mxu1 %v363_v59  ;;  %v673_v59 = vld [vmem:[#allocation8 + $0x370] sm:$0xff] }
 0x124   :  { %1837 = vmatprep.subr.mxu1 %v2329_v0 }
 0x125   :  { %1838 = vmatpush3.msra.mxu1 %v362_v60  ;;  %v672_v60 = vld [vmem:[#allocation8 + $0x368] sm:$0xff] }
 0x126   :  { %1839 = vmatprep.subr.mxu1 %v2329_v0 }
 0x127   :  { %1840 = vmatpush3.msra.mxu1 %v361_v61  ;;  %v671_v61 = vld [vmem:[#allocation8 + $0x360] sm:$0xff] }
 0x128   :  { %1841 = vmatprep.subr.mxu1 %v2329_v0 }
 0x129   :  { %1842 = vmatpush3.msra.mxu1 %v360_v62  ;;  %v670_v62 = vld [vmem:[#allocation8 + $0x358] sm:$0xff] }
 0x12a   :  { %1843 = vmatprep.subr.mxu1 %v2329_v0 }
 0x12b   :  { %1844 = vmatpush3.msra.mxu1 %v359_v63  ;;  %v669_v63 = vld [vmem:[#allocation8 + $0x350] sm:$0xff] }
 0x12c   :  { %1845 = vmatprep.subr.mxu1 %v2329_v0 }
 0x12d   :  { %1846 = vmatpush3.msra.mxu1 %v358_v1  ;;  %v668_v1 = vld [vmem:[#allocation8 + $0x348] sm:$0xff] }
 0x12e   :  { %1847 = vmatprep.subr.mxu1 %v2329_v0 }
 0x12f   :  { %1848 = vmatpush3.msra.mxu1 %v357_v2  ;;  %v667_v2 = vld [vmem:[#allocation8 + $0x340] sm:$0xff] }
 0x130   :  { %1849 = vmatprep.subr.mxu1 %v2329_v0 }
 0x131   :  { %1850 = vmatpush3.msra.mxu1 %v356_v3  ;;  %v666_v3 = vld [vmem:[#allocation8 + $0x338] sm:$0xff] }
 0x132   :  { %1851 = vmatprep.subr.mxu1 %v2329_v0 }
 0x133   :  { %1852 = vmatpush3.msra.mxu1 %v355_v4  ;;  %v665_v4 = vld [vmem:[#allocation8 + $0x330] sm:$0xff] }
 0x134   :  { %1853 = vmatprep.subr.mxu1 %v2329_v0 }
 0x135   :  { %1854 = vmatpush3.msra.mxu1 %v354_v10  ;;  %v660_v10 = vld [vmem:[#allocation8 + $0x308] sm:$0xff] }
 0x136   :  { %1855 = vmatprep.subr.mxu1 %v2329_v0 }
 0x137   :  { %1856 = vmatpush3.msra.mxu1 %v353_v11 }
 0x138   :  { %1857 = vmatprep.subr.mxu1 %v2329_v0 }
 0x139   :  { %1858 = vmatpush3.msra.mxu1 %v352_v12 }
 0x13a   :  { %1897 = vmatprep.subr.mxu1 %v2329_v0 }
 0x1da   :  { %v251_v6 = vpop.f32.mrf.mxu1 }
 0x1db   :  { %v252_v7 = vadd.f32 %v1485_v5, %v251_v6  ;;  %v664_v5 = vld [vmem:[#allocation8 + $0x328] sm:$0xff]  ;;  %v663_v6 = vld [vmem:[#allocation8 + $0x320] sm:$0xff] }
 0x1dc   :  { %v1791_v8 = vpop.f32.mrf.mxu1 }
 0x1dd   :  { %v255_v9 = vmax.f32 %v252_v7, 0.0  ;;  %v662_v7 = vld [vmem:[#allocation8 + $0x318] sm:$0xff]  ;;  %v661_v8 = vld [vmem:[#allocation8 + $0x310] sm:$0xff] }
 0x1df   :  { %1825 = vmatmul.mubr.f32.vlgmr.msra.gmra.mxu0 %v255_v9  ;;  %v1491_v9 = vld [vmem:[#allocation9 + $0x5] ss:$0 sm:$0xff] }
 0x1e0   :  { %1894 = vmatprep.mubr.msk.f32.mxu0 %vm2330_vm0, %v2329_v0  ;;  %1863 = vmatpush3.msra.mxu0 %v460_v13  ;;  %v659_v13 = vld [vmem:[#allocation8 + $0x300] sm:$0xff] }
 0x1e1   :  { %1864 = vmatprep.subr.mxu0 %v2329_v0 }
 0x1e2   :  { %1865 = vmatpush3.msra.mxu0 %v459_v14 }
 0x1e3   :  { %1866 = vmatprep.subr.mxu0 %v2329_v0 }
 0x1e4   :  { %1867 = vmatpush3.msra.mxu0 %v458_v15 }
 0x1e5   :  { %1868 = vmatprep.subr.mxu0 %v2329_v0 }
 0x1e6   :  { %1869 = vmatpush3.msra.mxu0 %v457_v16  ;;  %v1490_v16 = vld [vmem:[#allocation9 + $0x4] ss:$0 sm:$0xff] }
 0x1e7   :  { %1870 = vmatprep.subr.mxu0 %v2329_v0 }
 0x1e8   :  { %1871 = vmatpush3.msra.mxu0 %v456_v17 }
 0x1e9   :  { %1872 = vmatprep.subr.mxu0 %v2329_v0 }
 0x1ea   :  { %1873 = vmatpush3.msra.mxu0 %v455_v18 }
 0x1eb   :  { %1874 = vmatprep.subr.mxu0 %v2329_v0 }
 0x1ec   :  { %1875 = vmatpush3.msra.mxu0 %v454_v19 }
 0x1ed   :  { %1876 = vmatprep.subr.mxu0 %v2329_v0 }
 0x1ee   :  { %1877 = vmatpush3.msra.mxu0 %v453_v20 }
 0x1ef   :  { %1878 = vmatprep.subr.mxu0 %v2329_v0 }
 0x1f0   :  { %1879 = vmatpush3.msra.mxu0 %v452_v21 }
 0x1f1   :  { %1880 = vmatprep.subr.mxu0 %v2329_v0 }
 0x1f2   :  { %1881 = vmatpush3.msra.mxu0 %v451_v22 }
 0x1f3   :  { %1882 = vmatprep.subr.mxu0 %v2329_v0 }
 0x1f4   :  { %1883 = vmatpush3.msra.mxu0 %v450_v23 }
 0x1f5   :  { %1884 = vmatprep.subr.mxu0 %v2329_v0 }
 0x1f6   :  { %1885 = vmatpush3.msra.mxu0 %v449_v24 }
 0x1f7   :  { %1886 = vmatprep.subr.mxu0 %v2329_v0 }
 0x1f8   :  { %1887 = vmatpush3.msra.mxu0 %v448_v25  ;;  %v1494_v25 = vld [vmem:[#allocation9 + $0x6] ss:$0 sm:$0xff] }
 0x1f9   :  { %1888 = vmatprep.subr.mxu0 %v2329_v0 }
 0x1fa   :  { %1889 = vmatpush3.msra.mxu0 %v447_v26 }
 0x1fb   :  { %1890 = vmatprep.subr.mxu0 %v2329_v0 }
 0x1fc   :  { %1891 = vmatpush3.msra.mxu0 %v446_v50 }
 0x1fd   :  { %1892 = vmatprep.subr.mxu0 %v2329_v0 }
 0x1fe   :  { %1893 = vmatpush3.msra.mxu0 %v445_v51 }
 0x1ff   :  { %1932 = vmatprep.subr.mxu0 %v2329_v0 }
 0x29f   :  { %v344_v28 = vpop.f32.mrf.mxu0 }
 0x2a0   :  { %v345_v29 = vadd.f32 %v1486_v27, %v344_v28 }
 0x2a1   :  { %v1826_v30 = vpop.f32.mrf.mxu0 }
 0x2a2   :  { %v348_v31 = vmax.f32 %v345_v29, 0.0 }
 0x2a4   :  { %vm349_vm1 = vcmp.ne.f32.partialorder %v348_v31, %v348_v31 }
 0x2a5   :  { %v350_v33 = vsel %vm349_vm1, 0.0, %v348_v31  ;;  %vm2475_vm2 = vmneg %vm349_vm1  ;;  %vm1420_vm1 = vcmask 261312  }
 0x2a6   :  { %1860 = vmatmul.mubr.msk.f32.vlgmr.msra.gmra.mxu1 %vm2475_vm2, %v348_v31  ;;  %775 = vst [vmem:[#allocation2] sm:$0xff] %v350_v33 }
 0x2a7   :  { %1898 = vmatpush3.msra.mxu1 %v581_v32  ;;  %1929 = vmatprep.mubr.msk.f32.mxu1 %vm2330_vm0, %v2329_v0 }
 0x2a8   :  { %1899 = vmatprep.subr.mxu1 %v2329_v0 }
 0x2a9   :  { %1900 = vmatpush3.msra.mxu1 %v580_v35 }
 0x2aa   :  { %1901 = vmatprep.subr.mxu1 %v2329_v0 }
 0x2ab   :  { %1902 = vmatpush3.msra.mxu1 %v579_v36 }
 0x2ac   :  { %1903 = vmatprep.subr.mxu1 %v2329_v0 }
 0x2ad   :  { %1904 = vmatpush3.msra.mxu1 %v578_v37 }
 0x2ae   :  { %1905 = vmatprep.subr.mxu1 %v2329_v0 }
 0x2af   :  { %1906 = vmatpush3.msra.mxu1 %v577_v38 }
 0x2b0   :  { %1907 = vmatprep.subr.mxu1 %v2329_v0 }
 0x2b1   :  { %1908 = vmatpush3.msra.mxu1 %v576_v39 }
 0x2b2   :  { %1909 = vmatprep.subr.mxu1 %v2329_v0 }
 0x2b3   :  { %1910 = vmatpush3.msra.mxu1 %v575_v40 }
 0x2b4   :  { %1911 = vmatprep.subr.mxu1 %v2329_v0 }
 0x2b5   :  { %1912 = vmatpush3.msra.mxu1 %v574_v41 }
 0x2b6   :  { %1913 = vmatprep.subr.mxu1 %v2329_v0 }
 0x2b7   :  { %1914 = vmatpush3.msra.mxu1 %v573_v42  ;;  %v557_v42 = vpop.permute.xlu0 %556 }
 0x2b8   :  { %1915 = vmatprep.subr.mxu1 %v2329_v0 }
 0x2b9   :  { %1916 = vmatpush3.msra.mxu1 %v572_v43 }
 0x2ba   :  { %1917 = vmatprep.subr.mxu1 %v2329_v0 }
 0x2bb   :  { %1918 = vmatpush3.msra.mxu1 %v571_v44 }
 0x2bc   :  { %1919 = vmatprep.subr.mxu1 %v2329_v0 }
 0x2bd   :  { %1920 = vmatpush3.msra.mxu1 %v570_v45 }
 0x2be   :  { %1921 = vmatprep.subr.mxu1 %v2329_v0 }
 0x2bf   :  { %1922 = vmatpush3.msra.mxu1 %v569_v46 }
 0x2c0   :  { %1923 = vmatprep.subr.mxu1 %v2329_v0 }
 0x2c1   :  { %1924 = vmatpush3.msra.mxu1 %v568_v47 }
 0x2c2   :  { %1925 = vmatprep.subr.mxu1 %v2329_v0 }
 0x2c3   :  { %1926 = vmatpush3.msra.mxu1 %v567_v48 }
 0x2c4   :  { %1927 = vmatprep.subr.mxu1 %v2329_v0 }
 0x2c5   :  { %1928 = vmatpush3.msra.mxu1 %v566_v49 }
 0x2c6   :  { %1930 = vmatmul.mubr.msk.f32.vlgmr.msra.gmra.mxu1 %vm2475_vm2, %v348_v31  ;;  %1967 = vmatprep.subr.mxu1 %v2329_v0  ;;  %vm1426_vm2 = vcmask 277760  }
 0x2c7   :  { %1999 = vmatprep.mubr.msk.f32.mxu1 %vm2330_vm0, %v2329_v0 }
 0x366   :  { %v439_v54 = vpop.f32.mrf.mxu1 }
 0x367   :  { %v440_v55 = vadd.f32 %v1487_v53, %v439_v54 }
 0x368   :  { %v1861_v56 = vpop.f32.mrf.mxu1 }
 0x369   :  { %v443_v57 = vmax.f32 %v440_v55, 0.0 }
 0x36b   :  { %1895 = vmatmul.mubr.f32.vlgmr.msra.gmra.mxu0 %v443_v57 }
 0x36c   :  { %1933 = vmatpush3.msra.mxu0 %v674_v58  ;;  %1964 = vmatprep.mubr.msk.f32.mxu0 %vm2330_vm0, %v2329_v0 }
 0x36d   :  { %1934 = vmatprep.subr.mxu0 %v2329_v0 }
 0x36e   :  { %1935 = vmatpush3.msra.mxu0 %v673_v59 }
 0x36f   :  { %1936 = vmatprep.subr.mxu0 %v2329_v0 }
 0x370   :  { %1937 = vmatpush3.msra.mxu0 %v672_v60  ;;  %v805_v60 = vld [vmem:[#allocation8 + $0x3f8] sm:$0xff] }
 0x371   :  { %1938 = vmatprep.subr.mxu0 %v2329_v0  ;;  %1968 = vmatpush3.msra.mxu1 %v805_v60  ;;  %v1496_v60 = vld [vmem:[#allocation9 + $0x8] ss:$0 sm:$0xff] }
 0x372   :  { %1939 = vmatpush3.msra.mxu0 %v671_v61  ;;  %v804_v61 = vld [vmem:[#allocation8 + $0x3f0] sm:$0xff]  ;;  %1969 = vmatprep.subr.mxu1 %v2329_v0 }
 0x373   :  { %1940 = vmatprep.subr.mxu0 %v2329_v0  ;;  %1970 = vmatpush3.msra.mxu1 %v804_v61 }
 0x374   :  { %1941 = vmatpush3.msra.mxu0 %v670_v62  ;;  %v803_v62 = vld [vmem:[#allocation8 + $0x3e8] sm:$0xff]  ;;  %1971 = vmatprep.subr.mxu1 %v2329_v0 }
 0x375   :  { %1942 = vmatprep.subr.mxu0 %v2329_v0  ;;  %1972 = vmatpush3.msra.mxu1 %v803_v62 }
 0x376   :  { %1943 = vmatpush3.msra.mxu0 %v669_v63  ;;  %v802_v63 = vld [vmem:[#allocation8 + $0x3e0] sm:$0xff]  ;;  %1973 = vmatprep.subr.mxu1 %v2329_v0 }
 0x377   :  { %1944 = vmatprep.subr.mxu0 %v2329_v0  ;;  %1974 = vmatpush3.msra.mxu1 %v802_v63 }
 0x378   :  { %1945 = vmatpush3.msra.mxu0 %v668_v1  ;;  %v801_v1 = vld [vmem:[#allocation8 + $0x3d8] sm:$0xff]  ;;  %1975 = vmatprep.subr.mxu1 %v2329_v0 }
 0x379   :  { %1946 = vmatprep.subr.mxu0 %v2329_v0  ;;  %1976 = vmatpush3.msra.mxu1 %v801_v1 }
 0x37a   :  { %1947 = vmatpush3.msra.mxu0 %v667_v2  ;;  %v800_v2 = vld [vmem:[#allocation8 + $0x3d0] sm:$0xff]  ;;  %1977 = vmatprep.subr.mxu1 %v2329_v0 }
 0x37b   :  { %1948 = vmatprep.subr.mxu0 %v2329_v0  ;;  %1978 = vmatpush3.msra.mxu1 %v800_v2  ;;  %v1497_v2 = vld [vmem:[#allocation9 + $0x9] ss:$0 sm:$0xff] }
 0x37c   :  { %1949 = vmatpush3.msra.mxu0 %v666_v3  ;;  %1979 = vmatprep.subr.mxu1 %v2329_v0 }
 0x37d   :  { %1950 = vmatprep.subr.mxu0 %v2329_v0 }
 0x37e   :  { %1951 = vmatpush3.msra.mxu0 %v665_v4  ;;  %v799_v4 = vld [vmem:[#allocation8 + $0x3c8] sm:$0xff] }
 0x37f   :  { %1952 = vmatprep.subr.mxu0 %v2329_v0  ;;  %1980 = vmatpush3.msra.mxu1 %v799_v4 }
 0x380   :  { %1953 = vmatpush3.msra.mxu0 %v664_v5  ;;  %1981 = vmatprep.subr.mxu1 %v2329_v0 }
 0x381   :  { %1954 = vmatprep.subr.mxu0 %v2329_v0 }
 0x382   :  { %1955 = vmatpush3.msra.mxu0 %v663_v6  ;;  %v798_v6 = vld [vmem:[#allocation8 + $0x3c0] sm:$0xff] }
 0x383   :  { %1956 = vmatprep.subr.mxu0 %v2329_v0  ;;  %1982 = vmatpush3.msra.mxu1 %v798_v6 }
 0x384   :  { %1957 = vmatpush3.msra.mxu0 %v662_v7  ;;  %v797_v7 = vld [vmem:[#allocation8 + $0x3b8] sm:$0xff]  ;;  %1983 = vmatprep.subr.mxu1 %v2329_v0 }
 0x385   :  { %1958 = vmatprep.subr.mxu0 %v2329_v0  ;;  %1984 = vmatpush3.msra.mxu1 %v797_v7 }
 0x386   :  { %v653_v11 = vpop.f32.mrf.mxu1  ;;  %1959 = vmatpush3.msra.mxu0 %v661_v8  ;;  %v796_v8 = vld [vmem:[#allocation8 + $0x3b0] sm:$0xff]  ;;  %1985 = vmatprep.subr.mxu1 %v2329_v0 }
 0x387   :  { %v654_v12 = vadd.f32 %v1491_v9, %v653_v11  ;;  %1960 = vmatprep.subr.mxu0 %v2329_v0  ;;  %v795_v9 = vld [vmem:[#allocation8 + $0x3a8] sm:$0xff]  ;;  %1986 = vmatpush3.msra.mxu1 %v796_v8  ;;  %v793_v11 = vld [vmem:[#allocation8 + $0x398] sm:$0xff] }
 0x388   :  { %v1931_v14 = vpop.f32.mrf.mxu1  ;;  %1961 = vmatpush3.msra.mxu0 %v660_v10  ;;  %1987 = vmatprep.subr.mxu1 %v2329_v0  ;;  %v794_v10 = vld [vmem:[#allocation8 + $0x3a0] sm:$0xff] }
 0x389   :  { %v657_v15 = vmax.f32 %v654_v12, 0.0  ;;  %1962 = vmatprep.subr.mxu0 %v2329_v0  ;;  %1988 = vmatpush3.msra.mxu1 %v795_v9  ;;  %v792_v12 = vld [vmem:[#allocation8 + $0x390] sm:$0xff]  ;;  %v790_v14 = vld [vmem:[#allocation8 + $0x380] sm:$0xff] }
 0x38a   :  { %1963 = vmatpush3.msra.mxu0 %v659_v13  ;;  %1989 = vmatprep.subr.mxu1 %v2329_v0  ;;  %v791_v13 = vld [vmem:[#allocation8 + $0x388] sm:$0xff] }
 0x38b   :  { %1965 = vmatmul.mubr.f32.vlgmr.msra.gmra.mxu0 %v657_v15  ;;  %2002 = vmatprep.subr.mxu0 %v2329_v0  ;;  %v898_v15 = vld [vmem:[#allocation8 + $0x478] sm:$0xff] }
 0x38c   :  { %2034 = vmatprep.mubr.msk.f32.mxu0 %vm2330_vm0, %v2329_v0  ;;  %1990 = vmatpush3.msra.mxu1 %v794_v10 }
 0x38d   :  { %1991 = vmatprep.subr.mxu1 %v2329_v0  ;;  %2003 = vmatpush3.msra.mxu0 %v898_v15 }
 0x38e   :  { %1992 = vmatpush3.msra.mxu1 %v793_v11  ;;  %2004 = vmatprep.subr.mxu0 %v2329_v0 }
 0x38f   :  { %1993 = vmatprep.subr.mxu1 %v2329_v0 }
 0x390   :  { %1994 = vmatpush3.msra.mxu1 %v792_v12 }
 0x391   :  { %1995 = vmatprep.subr.mxu1 %v2329_v0 }
 0x392   :  { %1996 = vmatpush3.msra.mxu1 %v791_v13 }
 0x393   :  { %1997 = vmatprep.subr.mxu1 %v2329_v0 }
 0x394   :  { %1998 = vmatpush3.msra.mxu1 %v790_v14 }
 0x395   :  { %2037 = vmatprep.subr.mxu1 %v2329_v0 }
 0x42b   :  { %v532_v17 = vpop.f32.mrf.mxu0 }
 0x42c   :  { %v2529_v18 = vadd.f32 %v1490_v16, %v532_v17  ;;  %v897_v16 = vld [vmem:[#allocation8 + $0x470] sm:$0xff] }
 0x42d   :  { %v1896_v19 = vpop.f32.mrf.mxu0  ;;  %2005 = vmatpush3.msra.mxu0 %v897_v16 }
 0x42e   :  { %v539_v20 = vand.u32 2147483647, %v2529_v18  ;;  %1407 = vst.msk [vmem:[#allocation11] sm:$0xff] %vm1406_vm3, %v2529_v18  ;;  %v536_v38 = vmax.f32 %v2529_v18, 0.0  ;;  %vm537_vm5 = vcmp.ne.f32.partialorder %v2529_v18, %v2529_v18  ;;  %2006 = vmatprep.subr.mxu0 %v2329_v0  ;;  %vm1432_vm3 = vcmask 294160  }
 0x430   :  { %v540_v21 = vsub.f32 0.0, %v539_v20  ;;  %v895_v20 = vld [vmem:[#allocation8 + $0x460] sm:$0xff] }
 0x432   :  { %v541_v22 = vmul.f32 1.442695, %v540_v21  ;;  %v894_v21 = vld [vmem:[#allocation8 + $0x458] sm:$0xff] }
 0x434   :  { %2199 = vpow2.f32 %v541_v22  ;;  %v893_v22 = vld [vmem:[#allocation8 + $0x450] sm:$0xff] }
 0x441   :  { %v2200_v23 = vpop.eup %2199 }
 0x442   :  { %v543_v24 = vadd.f32 1.0, %v2200_v23  ;;  %v546_v26 = vmul.f32 -0.5, %v2200_v23  ;;  %v549_v32 = vand.u32 2147483647, %v2200_v23 }
 0x444   :  { %2201 = vlog2.f32 %v543_v24  ;;  %v547_v31 = vadd.f32 1.0, %v546_v26  ;;  %vm550_vm4 = vcmp.lt.f32.partialorder %v549_v32, 0.0004427343  ;;  %v891_v24 = vld [vmem:[#allocation8 + $0x440] sm:$0xff]  ;;  %v889_v26 = vld [vmem:[#allocation8 + $0x430] sm:$0xff] }
 0x446   :  { %v548_v37 = vmul.f32 %v2200_v23, %v547_v31  ;;  %v892_v23 = vld [vmem:[#allocation8 + $0x448] sm:$0xff] }
 0x44b   :  { %v746_v27 = vpop.f32.mrf.mxu0 }
 0x44c   :  { %v2533_v28 = vadd.f32 %v1494_v25, %v746_v27  ;;  %v890_v25 = vld [vmem:[#allocation8 + $0x438] sm:$0xff]  ;;  %v888_v27 = vld [vmem:[#allocation8 + $0x428] sm:$0xff] }
 0x44d   :  { %v1966_v29 = vpop.f32.mrf.mxu0 }
 0x44e   :  { %v753_v30 = vand.u32 2147483647, %v2533_v28  ;;  %v750_v54 = vmax.f32 %v2533_v28, 0.0  ;;  %vm751_vm8 = vcmp.ne.f32.partialorder %v2533_v28, %v2533_v28  ;;  %v887_v29 = vld [vmem:[#allocation8 + $0x420] sm:$0xff] }
 0x450   :  { %v754_v33 = vsub.f32 0.0, %v753_v30  ;;  %v886_v30 = vld [vmem:[#allocation8 + $0x418] sm:$0xff] }
 0x451   :  { %v2202_v34 = vpop.eup %2201 }
 0x452   :  { %v755_v35 = vmul.f32 1.442695, %v754_v33  ;;  %v545_v36 = vmul.f32 0.6931472, %v2202_v34  ;;  %v885_v34 = vld [vmem:[#allocation8 + $0x410] sm:$0xff] }
 0x454   :  { %2203 = vpow2.f32 %v755_v35  ;;  %v551_v39 = vsel %vm550_vm4, %v548_v37, %v545_v36  ;;  %v884_v35 = vld [vmem:[#allocation8 + $0x408] sm:$0xff]  ;;  %v883_v36 = vld [vmem:[#allocation8 + $0x400] sm:$0xff]  ;;  %v991_v37 = vld [vmem:[#allocation8 + $0x4f8] sm:$0xff]  ;;  %vm1438_vm4 = vcmask 326944  }
 0x455   :  { %v552_v40 = vadd.f32 %v551_v39, %v536_v38  ;;  %v990_v38 = vld [vmem:[#allocation8 + $0x4f0] sm:$0xff]  ;;  %v989_v39 = vld [vmem:[#allocation8 + $0x4e8] sm:$0xff] }
 0x457   :  { %v553_v41 = vsel %vm537_vm5, %v2529_v18, %v552_v40  ;;  %v988_v40 = vld [vmem:[#allocation8 + $0x4e0] sm:$0xff]  ;;  %vm1444_vm5 = vcmask 359744  }
 0x458   :  { %v554_v43 = vadd.f32 1e-09, %v553_v41  ;;  %v987_v41 = vld [vmem:[#allocation8 + $0x4d8] sm:$0xff] }
 0x45a   :  { %v559_v44 = vmul.f32 %v557_v42, %v554_v43  ;;  %1409 = vst.msk [vmem:[#allocation11] sm:$0xff] %vm1408_vm6, %v554_v43  ;;  %v986_v42 = vld [vmem:[#allocation8 + $0x4d0] sm:$0xff]  ;;  %v985_v43 = vld [vmem:[#allocation8 + $0x4c8] sm:$0xff]  ;;  %vm1449_vm6 = vcmask 425312  }
 0x45c   :  { %561 = vrot.lane.b32.xlu0 %v559_v44, %s2331_s2  ;;  %v984_v44 = vld [vmem:[#allocation8 + $0x4c0] sm:$0xff] }
 0x461   :  { %v2204_v45 = vpop.eup %2203 }
 0x462   :  { %v757_v46 = vadd.f32 1.0, %v2204_v45  ;;  %v760_v47 = vmul.f32 -0.5, %v2204_v45  ;;  %v763_v49 = vand.u32 2147483647, %v2204_v45 }
 0x464   :  { %2205 = vlog2.f32 %v757_v46  ;;  %v761_v48 = vadd.f32 1.0, %v760_v47  ;;  %vm764_vm7 = vcmp.lt.f32.partialorder %v763_v49, 0.0004427343  ;;  %v982_v46 = vld [vmem:[#allocation8 + $0x4b0] sm:$0xff]  ;;  %v981_v47 = vld [vmem:[#allocation8 + $0x4a8] sm:$0xff]  ;;  %v979_v49 = vld [vmem:[#allocation8 + $0x498] sm:$0xff] }
 0x466   :  { %v762_v53 = vmul.f32 %v2204_v45, %v761_v48  ;;  %v983_v45 = vld [vmem:[#allocation8 + $0x4b8] sm:$0xff]  ;;  %v980_v48 = vld [vmem:[#allocation8 + $0x4a0] sm:$0xff] }
 0x471   :  { %v2206_v50 = vpop.eup %2205 }
 0x472   :  { %v759_v51 = vmul.f32 0.6931472, %v2206_v50  ;;  %v1495_v50 = vld [vmem:[#allocation9 + $0x7] ss:$0 sm:$0xff] }
 0x474   :  { %v765_v55 = vsel %vm764_vm7, %v762_v53, %v759_v51  ;;  %vm1454_vm7 = vcmask 490912  }
 0x475   :  { %v766_v56 = vadd.f32 %v765_v55, %v750_v54 }
 0x477   :  { %v767_v57 = vsel %vm751_vm8, %v2533_v28, %v766_v56  ;;  %v978_v56 = vld [vmem:[#allocation8 + $0x490] sm:$0xff]  ;;  %vm1459_vm8 = vcmask 507360  }
 0x478   :  { %v2544_v58 = vadd.f32 1e-09, %v767_v57  ;;  %v977_v57 = vld [vmem:[#allocation8 + $0x488] sm:$0xff] }
 0x47a   :  { %v769_v59 = vmul.f32 %v2544_v58, %v2505_v52 }
 0x47c   :  { %771 = vrot.lane.b32.xlu1 %v769_v59, %s2331_s2  ;;  %v976_v59 = vld [vmem:[#allocation8 + $0x480] sm:$0xff] }
 0x4ce   :  { %v562_v3 = vpop.permute.xlu0 %561 }
 0x4cf   :  { %v2554_v5 = vadd.f32 %v562_v3, %v2529_v18  ;;  %v896_v18 = vld [vmem:[#allocation8 + $0x468] sm:$0xff] }
 0x4d0   :  { %2007 = vmatpush3.msra.mxu0 %v896_v18 }
 0x4d1   :  { %777 = vrot.lane.b32.xlu1 %v2554_v5, %s2332_s3  ;;  %2008 = vmatprep.subr.mxu0 %v2329_v0 }
 0x4d2   :  { %2009 = vmatpush3.msra.mxu0 %v895_v20 }
 0x4d3   :  { %2010 = vmatprep.subr.mxu0 %v2329_v0 }
 0x4d4   :  { %2011 = vmatpush3.msra.mxu0 %v894_v21 }
 0x4d5   :  { %2012 = vmatprep.subr.mxu0 %v2329_v0  ;;  %1086 = vrot.lane.b32.xlu1 %v2505_v52, %s2334_s10 }
 0x4d6   :  { %2013 = vmatpush3.msra.mxu0 %v893_v22 }
 0x4d7   :  { %2014 = vmatprep.subr.mxu0 %v2329_v0 }
 0x4d8   :  { %2015 = vmatpush3.msra.mxu0 %v892_v23 }
 0x4d9   :  { %2016 = vmatprep.subr.mxu0 %v2329_v0 }
 0x4da   :  { %2017 = vmatpush3.msra.mxu0 %v891_v24  ;;  %v1118_v24 = vld [vmem:[#allocation8 + $0x578] sm:$0xff] }
 0x4db   :  { %2018 = vmatprep.subr.mxu0 %v2329_v0 }
 0x4dc   :  { %2019 = vmatpush3.msra.mxu0 %v890_v25  ;;  %v1117_v25 = vld [vmem:[#allocation8 + $0x570] sm:$0xff] }
 0x4dd   :  { %2020 = vmatprep.subr.mxu0 %v2329_v0 }
 0x4de   :  { %2021 = vmatpush3.msra.mxu0 %v889_v26 }
 0x4df   :  { %2022 = vmatprep.subr.mxu0 %v2329_v0 }
 0x4e0   :  { %2023 = vmatpush3.msra.mxu0 %v888_v27  ;;  %v1116_v27 = vld [vmem:[#allocation8 + $0x568] sm:$0xff] }
 0x4e1   :  { %2024 = vmatprep.subr.mxu0 %v2329_v0 }
 0x4e2   :  { %2025 = vmatpush3.msra.mxu0 %v887_v29  ;;  %v1115_v29 = vld [vmem:[#allocation8 + $0x560] sm:$0xff] }
 0x4e3   :  { %2026 = vmatprep.subr.mxu0 %v2329_v0 }
 0x4e4   :  { %2027 = vmatpush3.msra.mxu0 %v886_v30  ;;  %v1114_v30 = vld [vmem:[#allocation8 + $0x558] sm:$0xff] }
 0x4e5   :  { %2028 = vmatprep.subr.mxu0 %v2329_v0 }
 0x4e6   :  { %2029 = vmatpush3.msra.mxu0 %v885_v34  ;;  %v1110_v34 = vld [vmem:[#allocation8 + $0x538] sm:$0xff] }
 0x4e7   :  { %2030 = vmatprep.subr.mxu0 %v2329_v0 }
 0x4e8   :  { %2031 = vmatpush3.msra.mxu0 %v884_v35  ;;  %v1109_v35 = vld [vmem:[#allocation8 + $0x530] sm:$0xff] }
 0x4e9   :  { %2032 = vmatprep.subr.mxu0 %v2329_v0 }
 0x4ea   :  { %2033 = vmatpush3.msra.mxu0 %v883_v36  ;;  %v1108_v36 = vld [vmem:[#allocation8 + $0x528] sm:$0xff] }
 0x4eb   :  { %2072 = vmatprep.subr.mxu0 %v2329_v0 }
 0x4ee   :  { %v772_v17 = vpop.permute.xlu1 %771 }
 0x4ef   :  { %v2571_v19 = vadd.f32 %v772_v17, %v2533_v28 }
 0x4f1   :  { %783 = vrot.lane.b32.xlu0 %v2571_v19, %s2333_s9 }
 0x543   :  { %v778_v31 = vpop.permute.xlu1 %777 }
 0x544   :  { %781 = vst.msk [vmem:[#allocation2] sm:$0xff] %vm780_vm9, %v778_v31  ;;  %v1113_v31 = vld [vmem:[#allocation8 + $0x550] sm:$0xff]  ;;  %vm1465_vm9 = vcmask 540144  }
 0x547   :  { %v2619_v22 = vpop.permute.xlu1 %1086 }
 0x563   :  { %v784_v32 = vpop.permute.xlu0 %783 }
 0x564   :  { %787 = vst.msk [vmem:[#allocation2] sm:$0xff] %vm786_vm10, %v784_v32  ;;  %v1112_v32 = vld [vmem:[#allocation8 + $0x548] sm:$0xff] }
 0x56b   :  { %v788_v33 = vld [vmem:[#allocation2] sm:$0xff] }
 0x56c   :  { %2000 = vmatmul.mubr.f32.vlgmr.msra.gmra.mxu1 %v788_v33  ;;  %v1111_v33 = vld [vmem:[#allocation8 + $0x540] sm:$0xff] }
 0x56d   :  { %2069 = vmatprep.mubr.msk.f32.mxu1 %vm2330_vm0, %v2329_v0  ;;  %2038 = vmatpush3.msra.mxu1 %v991_v37  ;;  %v1107_v37 = vld [vmem:[#allocation8 + $0x520] sm:$0xff] }
 0x56e   :  { %2039 = vmatprep.subr.mxu1 %v2329_v0 }
 0x56f   :  { %2040 = vmatpush3.msra.mxu1 %v990_v38  ;;  %v1106_v38 = vld [vmem:[#allocation8 + $0x518] sm:$0xff] }
 0x570   :  { %2041 = vmatprep.subr.mxu1 %v2329_v0 }
 0x571   :  { %2042 = vmatpush3.msra.mxu1 %v989_v39  ;;  %v1105_v39 = vld [vmem:[#allocation8 + $0x510] sm:$0xff] }
 0x572   :  { %2043 = vmatprep.subr.mxu1 %v2329_v0 }
 0x573   :  { %2044 = vmatpush3.msra.mxu1 %v988_v40  ;;  %v1104_v40 = vld [vmem:[#allocation8 + $0x508] sm:$0xff] }
 0x574   :  { %2045 = vmatprep.subr.mxu1 %v2329_v0 }
 0x575   :  { %2046 = vmatpush3.msra.mxu1 %v987_v41  ;;  %v1103_v41 = vld [vmem:[#allocation8 + $0x500] sm:$0xff] }
 0x576   :  { %2047 = vmatprep.subr.mxu1 %v2329_v0 }
 0x577   :  { %2048 = vmatpush3.msra.mxu1 %v986_v42  ;;  %v1211_v42 = vld [vmem:[#allocation8 + $0x5f8] sm:$0xff] }
 0x578   :  { %2049 = vmatprep.subr.mxu1 %v2329_v0 }
 0x579   :  { %2050 = vmatpush3.msra.mxu1 %v985_v43  ;;  %v1210_v43 = vld [vmem:[#allocation8 + $0x5f0] sm:$0xff] }
 0x57a   :  { %2051 = vmatprep.subr.mxu1 %v2329_v0 }
 0x57b   :  { %2052 = vmatpush3.msra.mxu1 %v984_v44 }
 0x57c   :  { %2053 = vmatprep.subr.mxu1 %v2329_v0 }
 0x57d   :  { %2054 = vmatpush3.msra.mxu1 %v983_v45  ;;  %v1209_v45 = vld [vmem:[#allocation8 + $0x5e8] sm:$0xff] }
 0x57e   :  { %2055 = vmatprep.subr.mxu1 %v2329_v0 }
 0x57f   :  { %2056 = vmatpush3.msra.mxu1 %v982_v46 }
 0x580   :  { %2057 = vmatprep.subr.mxu1 %v2329_v0 }
 0x581   :  { %2058 = vmatpush3.msra.mxu1 %v981_v47  ;;  %v1208_v47 = vld [vmem:[#allocation8 + $0x5e0] sm:$0xff] }
 0x582   :  { %2059 = vmatprep.subr.mxu1 %v2329_v0 }
 0x583   :  { %2060 = vmatpush3.msra.mxu1 %v980_v48  ;;  %v1207_v48 = vld [vmem:[#allocation8 + $0x5d8] sm:$0xff] }
 0x584   :  { %2061 = vmatprep.subr.mxu1 %v2329_v0 }
 0x585   :  { %2062 = vmatpush3.msra.mxu1 %v979_v49  ;;  %v1206_v49 = vld [vmem:[#allocation8 + $0x5d0] sm:$0xff] }
 0x586   :  { %2063 = vmatprep.subr.mxu1 %v2329_v0 }
 0x587   :  { %2064 = vmatpush3.msra.mxu1 %v978_v56  ;;  %v1199_v56 = vld [vmem:[#allocation8 + $0x598] sm:$0xff] }
 0x588   :  { %2065 = vmatprep.subr.mxu1 %v2329_v0 }
 0x589   :  { %2066 = vmatpush3.msra.mxu1 %v977_v57 }
 0x58a   :  { %2067 = vmatprep.subr.mxu1 %v2329_v0 }
 0x58b   :  { %2068 = vmatpush3.msra.mxu1 %v976_v59 }
 0x58c   :  { %2107 = vmatprep.subr.mxu1 %v2329_v0 }
 0x62c   :  { %v877_v51 = vpop.f32.mrf.mxu1 }
 0x62d   :  { %v878_v53 = vadd.f32 %v1495_v50, %v877_v51  ;;  %v1205_v50 = vld [vmem:[#allocation8 + $0x5c8] sm:$0xff]  ;;  %v1204_v51 = vld [vmem:[#allocation8 + $0x5c0] sm:$0xff] }
 0x62e   :  { %v2001_v54 = vpop.f32.mrf.mxu1 }
 0x62f   :  { %v881_v55 = vmax.f32 %v878_v53, 0.0  ;;  %v1203_v53 = vld [vmem:[#allocation8 + $0x5b8] sm:$0xff]  ;;  %v1202_v54 = vld [vmem:[#allocation8 + $0x5b0] sm:$0xff] }
 0x631   :  { %2035 = vmatmul.mubr.f32.vlgmr.msra.gmra.mxu0 %v881_v55  ;;  %v1200_v55 = vld [vmem:[#allocation8 + $0x5a0] sm:$0xff] }
 0x632   :  { %2104 = vmatprep.mubr.msk.f32.mxu0 %vm2330_vm0, %v2329_v0  ;;  %2073 = vmatpush3.msra.mxu0 %v1118_v24  ;;  %v1289_v24 = vld [vmem:[#allocation8 + $0x600] sm:$0xff] }
 0x633   :  { %2074 = vmatprep.subr.mxu0 %v2329_v0 }
 0x634   :  { %2075 = vmatpush3.msra.mxu0 %v1117_v25  ;;  %v1499_v25 = vld [vmem:[#allocation9 + $0xb] ss:$0 sm:$0xff] }
 0x635   :  { %2076 = vmatprep.subr.mxu0 %v2329_v0 }
 0x636   :  { %2077 = vmatpush3.msra.mxu0 %v1116_v27 }
 0x637   :  { %2078 = vmatprep.subr.mxu0 %v2329_v0 }
 0x638   :  { %2079 = vmatpush3.msra.mxu0 %v1115_v29 }
 0x639   :  { %2080 = vmatprep.subr.mxu0 %v2329_v0 }
 0x63a   :  { %2081 = vmatpush3.msra.mxu0 %v1114_v30 }
 0x63b   :  { %2082 = vmatprep.subr.mxu0 %v2329_v0 }
 0x63c   :  { %2083 = vmatpush3.msra.mxu0 %v1113_v31  ;;  %v1500_v31 = vld [vmem:[#allocation9 + $0xc] ss:$0 sm:$0xff] }
 0x63d   :  { %2084 = vmatprep.subr.mxu0 %v2329_v0 }
 0x63e   :  { %2085 = vmatpush3.msra.mxu0 %v1112_v32 }
 0x63f   :  { %2086 = vmatprep.subr.mxu0 %v2329_v0 }
 0x640   :  { %2087 = vmatpush3.msra.mxu0 %v1111_v33 }
 0x641   :  { %2088 = vmatprep.subr.mxu0 %v2329_v0 }
 0x642   :  { %2089 = vmatpush3.msra.mxu0 %v1110_v34 }
 0x643   :  { %2090 = vmatprep.subr.mxu0 %v2329_v0 }
 0x644   :  { %2091 = vmatpush3.msra.mxu0 %v1109_v35 }
 0x645   :  { %2092 = vmatprep.subr.mxu0 %v2329_v0 }
 0x646   :  { %2093 = vmatpush3.msra.mxu0 %v1108_v36 }
 0x647   :  { %2094 = vmatprep.subr.mxu0 %v2329_v0 }
 0x648   :  { %2095 = vmatpush3.msra.mxu0 %v1107_v37 }
 0x649   :  { %2096 = vmatprep.subr.mxu0 %v2329_v0 }
 0x64a   :  { %2097 = vmatpush3.msra.mxu0 %v1106_v38 }
 0x64b   :  { %2098 = vmatprep.subr.mxu0 %v2329_v0 }
 0x64c   :  { %2099 = vmatpush3.msra.mxu0 %v1105_v39 }
 0x64d   :  { %2100 = vmatprep.subr.mxu0 %v2329_v0 }
 0x64e   :  { %2101 = vmatpush3.msra.mxu0 %v1104_v40 }
 0x64f   :  { %2102 = vmatprep.subr.mxu0 %v2329_v0 }
 0x650   :  { %2103 = vmatpush3.msra.mxu0 %v1103_v41 }
 0x651   :  { %2142 = vmatprep.subr.mxu0 %v2329_v0 }
 0x6f1   :  { %v970_v61 = vpop.f32.mrf.mxu0 }
 0x6f2   :  { %v971_v62 = vadd.f32 %v1496_v60, %v970_v61  ;;  %v1198_v61 = vld [vmem:[#allocation8 + $0x590] sm:$0xff] }
 0x6f3   :  { %v2036_v63 = vpop.f32.mrf.mxu0 }
 0x6f4   :  { %v974_v1 = vmax.f32 %v971_v62, 0.0  ;;  %v1197_v62 = vld [vmem:[#allocation8 + $0x588] sm:$0xff]  ;;  %v1196_v63 = vld [vmem:[#allocation8 + $0x580] sm:$0xff] }
 0x6f6   :  { %2070 = vmatmul.mubr.f32.vlgmr.msra.gmra.mxu1 %v974_v1  ;;  %v1304_v1 = vld [vmem:[#allocation8 + $0x678] sm:$0xff] }
 0x6f7   :  { %2139 = vmatprep.mubr.msk.f32.mxu1 %vm2330_vm0, %v2329_v0  ;;  %2108 = vmatpush3.msra.mxu1 %v1211_v42 }
 0x6f8   :  { %2109 = vmatprep.subr.mxu1 %v2329_v0 }
 0x6f9   :  { %2110 = vmatpush3.msra.mxu1 %v1210_v43 }
 0x6fa   :  { %2111 = vmatprep.subr.mxu1 %v2329_v0 }
 0x6fb   :  { %2112 = vmatpush3.msra.mxu1 %v1209_v45 }
 0x6fc   :  { %2113 = vmatprep.subr.mxu1 %v2329_v0 }
 0x6fd   :  { %2114 = vmatpush3.msra.mxu1 %v1208_v47 }
 0x6fe   :  { %2115 = vmatprep.subr.mxu1 %v2329_v0 }
 0x6ff   :  { %2116 = vmatpush3.msra.mxu1 %v1207_v48 }
 0x700   :  { %2117 = vmatprep.subr.mxu1 %v2329_v0 }
 0x701   :  { %2118 = vmatpush3.msra.mxu1 %v1206_v49 }
 0x702   :  { %2119 = vmatprep.subr.mxu1 %v2329_v0 }
 0x703   :  { %2120 = vmatpush3.msra.mxu1 %v1205_v50 }
 0x704   :  { %2121 = vmatprep.subr.mxu1 %v2329_v0 }
 0x705   :  { %2122 = vmatpush3.msra.mxu1 %v1204_v51 }
 0x706   :  { %2123 = vmatprep.subr.mxu1 %v2329_v0 }
 0x707   :  { %2124 = vmatpush3.msra.mxu1 %v1203_v53 }
 0x708   :  { %2125 = vmatprep.subr.mxu1 %v2329_v0 }
 0x709   :  { %2126 = vmatpush3.msra.mxu1 %v1202_v54 }
 0x70a   :  { %2127 = vmatprep.subr.mxu1 %v2329_v0 }
 0x7b6   :  { %v1063_v3 = vpop.f32.mrf.mxu1 }
 0x7b7   :  { %v2612_v4 = vadd.f32 %v1497_v2, %v1063_v3  ;;  %v1303_v2 = vld [vmem:[#allocation8 + $0x670] sm:$0xff]  ;;  %v1302_v3 = vld [vmem:[#allocation8 + $0x668] sm:$0xff] }
 0x7b8   :  { %v2071_v6 = vpop.f32.mrf.mxu1 }
 0x7b9   :  { %v1070_v7 = vand.u32 2147483647, %v2612_v4  ;;  %v1067_v17 = vmax.f32 %v2612_v4, 0.0  ;;  %vm1068_vm12 = vcmp.ne.f32.partialorder %v2612_v4, %v2612_v4  ;;  %v1300_v6 = vld [vmem:[#allocation8 + $0x658] sm:$0xff] }
 0x7bb   :  { %v1071_v8 = vsub.f32 0.0, %v1070_v7  ;;  %v1299_v7 = vld [vmem:[#allocation8 + $0x650] sm:$0xff] }
 0x7bd   :  { %v1072_v9 = vmul.f32 1.442695, %v1071_v8  ;;  %v1298_v8 = vld [vmem:[#allocation8 + $0x648] sm:$0xff] }
 0x7bf   :  { %2207 = vpow2.f32 %v1072_v9  ;;  %v1297_v9 = vld [vmem:[#allocation8 + $0x640] sm:$0xff] }
 0x7cc   :  { %v2208_v52 = vpop.eup %2207 }
 0x7cd   :  { %v1074_v10 = vadd.f32 1.0, %v2208_v52  ;;  %v1077_v11 = vmul.f32 -0.5, %v2208_v52  ;;  %v1080_v13 = vand.u32 2147483647, %v2208_v52 }
 0x7cf   :  { %2209 = vlog2.f32 %v1074_v10  ;;  %v1078_v12 = vadd.f32 1.0, %v1077_v11  ;;  %vm1081_vm11 = vcmp.lt.f32.partialorder %v1080_v13, 0.0004427343  ;;  %v1295_v10 = vld [vmem:[#allocation8 + $0x630] sm:$0xff]  ;;  %v1294_v11 = vld [vmem:[#allocation8 + $0x628] sm:$0xff]  ;;  %v1292_v13 = vld [vmem:[#allocation8 + $0x618] sm:$0xff] }
 0x7d1   :  { %v1079_v16 = vmul.f32 %v2208_v52, %v1078_v12  ;;  %v1296_v52 = vld [vmem:[#allocation8 + $0x638] sm:$0xff]  ;;  %v1293_v12 = vld [vmem:[#allocation8 + $0x620] sm:$0xff] }
 0x7dc   :  { %v2210_v14 = vpop.eup %2209 }
 0x7dd   :  { %v1076_v15 = vmul.f32 0.6931472, %v2210_v14  ;;  %v1498_v14 = vld [vmem:[#allocation9 + $0xa] ss:$0 sm:$0xff] }
 0x7df   :  { %v1082_v18 = vsel %vm1081_vm11, %v1079_v16, %v1076_v15 }
 0x7e0   :  { %v1083_v20 = vadd.f32 %v1082_v18, %v1067_v17 }
 0x7e2   :  { %v1084_v21 = vsel %vm1068_vm12, %v2612_v4, %v1083_v20  ;;  %v1291_v20 = vld [vmem:[#allocation8 + $0x610] sm:$0xff] }
 0x7e3   :  { %v2621_v23 = vadd.f32 1e-09, %v1084_v21  ;;  %v1290_v21 = vld [vmem:[#allocation8 + $0x608] sm:$0xff] }
 0x7e5   :  { %v1089_v26 = vmul.f32 %v2619_v22, %v2621_v23 }
 0x7e7   :  { %1091 = vrot.lane.b32.xlu0 %v1089_v26, %s2335_s11 }
 0x859   :  { %v1092_v44 = vpop.permute.xlu0 %1091 }
 0x85a   :  { %v2643_v46 = vadd.f32 %v1092_v44, %v2612_v4 }
 0x85c   :  { %1096 = vrot.lane.b32.xlu1 %v2643_v46, %s2336_s12 }
 0x860   :  { %1411 = vrot.lane.b32.xlu1 %v2533_v28, %s2337_s13  ;;  %v1201_v28 = vld [vmem:[#allocation8 + $0x5a8] sm:$0xff] }
 0x861   :  { %2128 = vmatpush3.msra.mxu1 %v1201_v28 }
 0x862   :  { %2129 = vmatprep.subr.mxu1 %v2329_v0 }
 0x863   :  { %2130 = vmatpush3.msra.mxu1 %v1200_v55 }
 0x864   :  { %1423 = vrot.lane.b32.xlu1 %v2612_v4, %s2332_s3  ;;  %2131 = vmatprep.subr.mxu1 %v2329_v0  ;;  %v1301_v4 = vld [vmem:[#allocation8 + $0x660] sm:$0xff] }
 0x865   :  { %2132 = vmatpush3.msra.mxu1 %v1199_v56 }
 0x866   :  { %2133 = vmatprep.subr.mxu1 %v2329_v0 }
 0x867   :  { %2134 = vmatpush3.msra.mxu1 %v1198_v61 }
 0x868   :  { %2135 = vmatprep.subr.mxu1 %v2329_v0 }
 0x869   :  { %2136 = vmatpush3.msra.mxu1 %v1197_v62 }
 0x86a   :  { %2137 = vmatprep.subr.mxu1 %v2329_v0 }
 0x86b   :  { %2138 = vmatpush3.msra.mxu1 %v1196_v63 }
 0x8ce   :  { %v1097_v57 = vpop.permute.xlu1 %1096 }
 0x8cf   :  { %1100 = vst.msk [vmem:[#allocation2] sm:$0xff] %vm1099_vm13, %v1097_v57 }
 0x8d2   :  { %v1412_v59 = vpop.permute.xlu1 %1411 }
 0x8d3   :  { %1415 = vst.msk [vmem:[#allocation11] sm:$0xff] %vm1414_vm14, %v1412_v59 }
 0x8d6   :  { %v1101_v60 = vld [vmem:[#allocation2] sm:$0xff]  ;;  %v1424_v51 = vpop.permute.xlu1 %1423 }
 0x8d7   :  { %2105 = vmatmul.mubr.f32.vlgmr.msra.gmra.mxu0 %v1101_v60 }
 0x8d8   :  { %2174 = vmatprep.mubr.msk.f32.mxu0 %vm2330_vm0, %v2329_v0  ;;  %2143 = vmatpush3.msra.mxu0 %v1304_v1 }
 0x8d9   :  { %2144 = vmatprep.subr.mxu0 %v2329_v0 }
 0x8da   :  { %2145 = vmatpush3.msra.mxu0 %v1303_v2 }
 0x8db   :  { %2146 = vmatprep.subr.mxu0 %v2329_v0 }
 0x8dc   :  { %2147 = vmatpush3.msra.mxu0 %v1302_v3 }
 0x8dd   :  { %2148 = vmatprep.subr.mxu0 %v2329_v0 }
 0x8de   :  { %2149 = vmatpush3.msra.mxu0 %v1301_v4 }
 0x8df   :  { %2150 = vmatprep.subr.mxu0 %v2329_v0 }
 0x8e0   :  { %2151 = vmatpush3.msra.mxu0 %v1300_v6 }
 0x8e1   :  { %2152 = vmatprep.subr.mxu0 %v2329_v0 }
 0x8e2   :  { %2153 = vmatpush3.msra.mxu0 %v1299_v7 }
 0x8e3   :  { %2154 = vmatprep.subr.mxu0 %v2329_v0 }
 0x8e4   :  { %2155 = vmatpush3.msra.mxu0 %v1298_v8 }
 0x8e5   :  { %2156 = vmatprep.subr.mxu0 %v2329_v0 }
 0x8e6   :  { %2157 = vmatpush3.msra.mxu0 %v1297_v9 }
 0x8e7   :  { %2158 = vmatprep.subr.mxu0 %v2329_v0 }
 0x8e8   :  { %2159 = vmatpush3.msra.mxu0 %v1296_v52 }
 0x8e9   :  { %2160 = vmatprep.subr.mxu0 %v2329_v0 }
 0x8ea   :  { %2161 = vmatpush3.msra.mxu0 %v1295_v10 }
 0x8eb   :  { %2162 = vmatprep.subr.mxu0 %v2329_v0 }
 0x8ec   :  { %2163 = vmatpush3.msra.mxu0 %v1294_v11 }
 0x8ed   :  { %2164 = vmatprep.subr.mxu0 %v2329_v0 }
 0x8ee   :  { %2165 = vmatpush3.msra.mxu0 %v1293_v12 }
 0x8ef   :  { %2166 = vmatprep.subr.mxu0 %v2329_v0 }
 0x8f0   :  { %2167 = vmatpush3.msra.mxu0 %v1292_v13 }
 0x8f1   :  { %2168 = vmatprep.subr.mxu0 %v2329_v0 }
 0x8f2   :  { %2169 = vmatpush3.msra.mxu0 %v1291_v20 }
 0x8f3   :  { %2170 = vmatprep.subr.mxu0 %v2329_v0 }
 0x8f4   :  { %2171 = vmatpush3.msra.mxu0 %v1290_v21 }
 0x8f5   :  { %2172 = vmatprep.subr.mxu0 %v2329_v0 }
 0x8f6   :  { %2173 = vmatpush3.msra.mxu0 %v1289_v24 }
 0x997   :  { %v1190_v15 = vpop.f32.mrf.mxu0 }
 0x998   :  { %v1191_v16 = vadd.f32 %v1498_v14, %v1190_v15 }
 0x999   :  { %v2106_v17 = vpop.f32.mrf.mxu0 }
 0x99a   :  { %v1194_v18 = vmax.f32 %v1191_v16, 0.0 }
 0x99c   :  { %2140 = vmatmul.mubr.f32.vlgmr.msra.gmra.mxu1 %v1194_v18 }
 0xa5c   :  { %v1283_v26 = vpop.f32.mrf.mxu1 }
 0xa5d   :  { %v1284_v27 = vadd.f32 %v1499_v25, %v1283_v26 }
 0xa5e   :  { %v2141_v29 = vpop.f32.mrf.mxu1 }
 0xa5f   :  { %v1287_v30 = vmax.f32 %v1284_v27, 0.0 }
 0xa61   :  { %2175 = vmatmul.mubr.f32.vlgmr.msra.gmra.mxu0 %v1287_v30 }
 0xb21   :  { %v1376_v32 = vpop.f32.mrf.mxu0 }
 0xb22   :  { %v1377_v33 = vadd.f32 %v1500_v31, %v1376_v32 }
 0xb23   :  { %v2176_v34 = vpop.f32.mrf.mxu0 }
 0xb24   :  { %v1383_v35 = vand.u32 2147483647, %v1377_v33  ;;  %1435 = vrot.lane.b32.xlu1 %v1377_v33, %s2338_s14  ;;  %v1380_v45 = vmax.f32 %v1377_v33, 0.0  ;;  %vm1381_vm0 = vcmp.ne.f32.partialorder %v1377_v33, %v1377_v33 }
 0xb26   :  { %v1384_v36 = vsub.f32 0.0, %v1383_v35 }
 0xb28   :  { %v1385_v37 = vmul.f32 1.442695, %v1384_v36  ;;  %1446 = vrot.lane.b32.xlu1 %v2554_v5, %s2339_s15 }
 0xb2a   :  { %2211 = vpow2.f32 %v1385_v37 }
 0xb2c   :  { %1456 = vrot.lane.b32.xlu1 %v2643_v46, %s2340_s16 }
 0xb37   :  { %v2212_v0 = vpop.eup %2211 }
 0xb38   :  { %v1387_v38 = vadd.f32 1.0, %v2212_v0  ;;  %v1390_v39 = vmul.f32 -0.5, %v2212_v0  ;;  %v1393_v41 = vand.u32 2147483647, %v2212_v0 }
 0xb3a   :  { %2213 = vlog2.f32 %v1387_v38  ;;  %v1391_v40 = vadd.f32 1.0, %v1390_v39  ;;  %vm1394_vm15 = vcmp.lt.f32.partialorder %v1393_v41, 0.0004427343 }
 0xb3c   :  { %v1392_v44 = vmul.f32 %v2212_v0, %v1391_v40 }
 0xb47   :  { %v2214_v42 = vpop.eup %2213 }
 0xb48   :  { %v1389_v43 = vmul.f32 0.6931472, %v2214_v42 }
 0xb4a   :  { %v1395_v47 = vsel %vm1394_vm15, %v1392_v44, %v1389_v43 }
 0xb4b   :  { %v1396_v48 = vadd.f32 %v1395_v47, %v1380_v45 }
 0xb4d   :  { %v1397_v49 = vsel %vm1381_vm0, %v1377_v33, %v1396_v48 }
 0xb4e   :  { %v1398_v5 = vadd.f32 1e-09, %v1397_v49 }
 0xb50   :  { %v1399_v50 = vmul.f32 %v1398_v5, %v2619_v22 }
 0xb52   :  { %1401 = vrot.lane.b32.xlu0 %v1399_v50, %s2341_s17 }
 0xb56   :  { %1417 = vrot.lane.b32.xlu0 %v2544_v58, %s2337_s13 }
 0xb5a   :  { %1429 = vrot.lane.b32.xlu0 %v2621_v23, %s2332_s3 }
 0xb5e   :  { %1441 = vrot.lane.b32.xlu0 %v1398_v5, %s2338_s14 }
 0xb62   :  { %1451 = vrot.lane.b32.xlu0 %v2571_v19, %s2342_s18 }
 0xb96   :  { %v1436_v54 = vpop.permute.xlu1 %1435 }
 0xb9a   :  { %v1447_v23 = vpop.permute.xlu1 %1446 }
 0xb9e   :  { %v1457_v55 = vpop.permute.xlu1 %1456 }
 0xbc4   :  { %v1402_v46 = vpop.permute.xlu0 %1401 }
 0xbc5   :  { %v1404_v53 = vadd.f32 %v1402_v46, %v1377_v33 }
 0xbc7   :  { %1462 = vrot.lane.b32.xlu0 %v1404_v53, %s2343_s19 }
 0xbc8   :  { %v1418_v22 = vpop.permute.xlu0 %1417 }
 0xbc9   :  { %1421 = vst.msk [vmem:[#allocation11] sm:$0xff] %vm1420_vm1, %v1418_v22 }
 0xbca   :  { %1427 = vst.msk [vmem:[#allocation11] sm:$0xff] %vm1426_vm2, %v1424_v51 }
 0xbcc   :  { %v1430_v58 = vpop.permute.xlu0 %1429 }
 0xbcd   :  { %1433 = vst.msk [vmem:[#allocation11] sm:$0xff] %vm1432_vm3, %v1430_v58 }
 0xbce   :  { %1439 = vst.msk [vmem:[#allocation11] sm:$0xff] %vm1438_vm4, %v1436_v54 }
 0xbd0   :  { %v1442_v19 = vpop.permute.xlu0 %1441 }
 0xbd1   :  { %1445 = vst.msk [vmem:[#allocation11] sm:$0xff] %vm1444_vm5, %v1442_v19 }
 0xbd2   :  { %1450 = vst.msk [vmem:[#allocation11] sm:$0xff] %vm1449_vm6, %v1447_v23 }
 0xbd4   :  { %v1452_v28 = vpop.permute.xlu0 %1451 }
 0xbd5   :  { %1455 = vst.msk [vmem:[#allocation11] sm:$0xff] %vm1454_vm7, %v1452_v28 }
 0xbd6   :  { %1460 = vst.msk [vmem:[#allocation11] sm:$0xff] %vm1459_vm8, %v1457_v55 }
 0xc39   :  { %v1463_v56 = vpop.permute.xlu0 %1462 }
 0xc3a   :  { %1466 = vst.msk [vmem:[#allocation11] sm:$0xff] %vm1465_vm9, %v1463_v56 }
 0xc3b   :  { %2306 = shalt.err (!%p2303_p10)
}
 0xc3c   :  { %1476 = dma.vmem_to_hbm [thread:$0]  %s1474_s21, 128, %s2698_s4, [#allocation5]  }
 0xc3d   :  { %2321 = dma.done.wait [#allocation5], 128  }
 0xc3e   :  { %2322 = vsyncadd [#allocation5], 4294967168 }
 0xc3f   :  { %1480 = vsyncpa [#allocation4], 1 }
 0xc40   :  { %1481 = vsyncpa [#allocation7], 1 }
 0xc41   :  { %1482 = vsyncpa [#allocation10], 1 }
 0xc42   :  { %1483 = vsyncpa [#allocation5], 1 }

</bundles_post_ra>
